<compile_context>
chip_gen: v6e
topology: v6e:2x2x1
jax: 0.10.0
libtpu: 0.0.40
codegen_flags: <defaults>
</compile_context>

<pallas_src>
import functools

import jax
import jax.numpy as jnp
from jax import lax
from jax.experimental import pallas as pl
from jax.experimental.pallas import tpu as pltpu


def _round_up(x, m):
    return ((x + m - 1) // m) * m


# -----------------------------------------------------------------------------
# Kernel: fused embedding-mean + multi-layer LSTM + length mask + FC, time-major
# -----------------------------------------------------------------------------
def _embed_lstm_fc_kernel(num_layers, hidden_dim, compute_dtype, *refs):
    """refs = [tok, mask, emb, (wih_t, whh_t, b) * L, wfc_t, bfc, out, gx, seq]

    tok   : (T, TB, K)     int32          time-major token ids
    mask  : (T, TB, 1)     compute_dtype  1.0 where t < len[b] else 0.0
    emb   : (V_pad, E)     compute_dtype  embedding table (row 0 is zeros)
    wih_t : (in, 4H)       compute_dtype  pre-transposed (gate order i, f, g, o)
    whh_t : (H, 4H)        compute_dtype  pre-transposed
    b     : (1, 4H)        f32            b_ih + b_hh
    wfc_t : (H, FCN)       compute_dtype  zero-padded to 128 lanes (MXU operand)
    bfc   : (1, FCN)       f32
    out   : (T, TB, O)     f32            un-padded logits (small O accepted)
    gx    : (T, TB, 4H)    compute_dtype  scratch: hoisted input projection
    seq   : (T, TB, H)     compute_dtype  scratch: per-layer output sequence
    """
    tok_ref, mask_ref, emb_ref = refs[0], refs[1], refs[2]
    layer_refs = refs[3:3 + 3 * num_layers]
    wfc_ref = refs[3 + 3 * num_layers]
    bfc_ref = refs[4 + 3 * num_layers]
    out_ref = refs[5 + 3 * num_layers]
    gx_ref, seq_ref = refs[6 + 3 * num_layers:]

    T, TB, K = tok_ref.shape
    H = hidden_dim
    V = emb_ref.shape[0]
    N = T * TB
    O = out_ref.shape[2]

    # ---- fused Embedding + mean over K: counts one-hot GEMM on the MXU ------
    # mean_k emb[tok_k] == (counts / K) @ emb   (emb row 0 is zero -> padding_idx=0)
    # TODO(synk): for very large vocabularies this one-hot GEMM is O(N*V);
    # keep the gather in XLA (or use a manual DMA gather) in that regime.
    tok2d = tok_ref[...].reshape(N, K)
    iota_v = lax.broadcasted_iota(jnp.int32, (N, V), 1)
    counts = jnp.zeros((N, V), jnp.float32)
    for k in range(K):                                        # K is small & static
        counts = counts + (tok2d[:, k:k + 1] == iota_v).astype(jnp.float32)
    x2d = jnp.dot((counts * (1.0 / K)).astype(compute_dtype), emb_ref[...],
                  preferred_element_type=jnp.float32)         # (N, E) f32
    layer0_in = x2d.astype(compute_dtype)

    unroll = True if T <= 16 else 8   # full unroll only for short sequences

    for layer in range(num_layers):
        wih_ref, whh_ref, b_ref = layer_refs[3 * layer:3 * layer + 3]

        # ---- hoisted input projection: ONE (N, in)x(in, 4H) GEMM + bias -----
        lin = layer0_in if layer == 0 else seq_ref[...].reshape(N, H)
        gx = jnp.dot(lin, wih_ref[...], preferred_element_type=jnp.float32)
        gx_ref[...] = (gx + b_ref[...]).astype(gx_ref.dtype).reshape(T, TB, 4 * H)

        whh = whh_ref[...]   # hoist recurrent-weight load out of the time loop

        def step(t, carry, whh=whh):
            h, c = carry                    # f32 vreg-resident state (no VMEM trip)
            g = gx_ref[t] + jnp.dot(h.astype(compute_dtype), whh,
                                    preferred_element_type=jnp.float32)
            if 4 * H <= 128:
                # one full-width sigmoid + one tanh over the whole (TB, 4H)
                # pre-activation, then slice gates -> 2 EUP pushes instead of 4
                # narrow sub-vreg pushes on the serial h->h chain.
                sg = jax.nn.sigmoid(g)
                tg = jnp.tanh(g)
                i_g, f_g, o_g = sg[:, 0:H], sg[:, H:2 * H], sg[:, 3 * H:4 * H]
                g_g = tg[:, 2 * H:3 * H]
            else:
                i_g = jax.nn.sigmoid(g[:, 0:H])
                f_g = jax.nn.sigmoid(g[:, H:2 * H])
                g_g = jnp.tanh(g[:, 2 * H:3 * H])
                o_g = jax.nn.sigmoid(g[:, 3 * H:4 * H])
            c_new = f_g * c + i_g * g_g
            h_new = o_g * jnp.tanh(c_new)
            seq_ref[t] = h_new.astype(seq_ref.dtype)   # only store per step
            return (h_new, c_new)

        z = jnp.zeros((TB, H), jnp.float32)
        lax.fori_loop(0, T, step, (z, z), unroll=unroll)

    # pack/pad semantics: zero the LSTM outputs at t >= len[b], then FC (+bias).
    seq2d = seq_ref[...].reshape(N, H)
    mask2d = mask_ref[...].reshape(N, 1)
    masked = seq2d * mask2d                                   # compute_dtype
    out_full = (jnp.dot(masked, wfc_ref[...], preferred_element_type=jnp.float32)
                + bfc_ref[...])                               # (N, FCN) f32
    out_ref[...] = out_full[:, :O].reshape(T, TB, O)          # only O columns to HBM


# -----------------------------------------------------------------------------
# Wrapper
# -----------------------------------------------------------------------------
def propensity_lstm_forward(params, x_tokens, lengths, *,
                            compute_dtype=jnp.bfloat16, batch_tile=None):
    """x_tokens: (B, T, K) int32 token ids; lengths: (B,) int32 valid lengths.

    Returns (logits (B, T, O) f32, lengths). Slice to max(lengths) to match
    pad_packed_sequence's T_out.
    """
    B, T, K = x_tokens.shape
    H = params['lstm'][0][1].shape[0]          # whh_t: (H, 4H)
    O = params['fc_w'].shape[1]
    V = params['embedding'].shape[0]
    num_layers = len(params['lstm'])

    # batch padded to a multiple of 8 (sublane / MXU row fill)
    B_pad = _round_up(max(B, 8), 8)
    if batch_tile is not None:
        TB = batch_tile
    elif B_pad >= 256 and B_pad % 16 == 0:
        TB = B_pad // 2   # >=2 grid blocks -> second TC (v7x) while keeping >=128 MXU rows
    else:
        TB = B_pad        # keep the MXU rows as full as the real batch allows
    TB = min(TB, B_pad)
    assert TB % 8 == 0 and B_pad % TB == 0

    # time-major int32 token ids (tiny); embedding gather/mean is fused in-kernel.
    tok_tm = jnp.transpose(x_tokens.astype(jnp.int32), (1, 0, 2))     # (T, B, K)
    tok_tm = jnp.pad(tok_tm, ((0, 0), (0, B_pad - B), (0, 0)))        # pad token = 0

    # length mask precomputed here so lengths never become a tiny VMEM int tile
    len_pad = jnp.pad(lengths.astype(jnp.int32), (0, B_pad - B))
    mask = (jnp.arange(T, dtype=jnp.int32)[:, None] < len_pad[None, :])
    mask = mask.astype(compute_dtype)[:, :, None]                     # (T, B_pad, 1)

    # embedding table, vocab padded to 128 so the one-hot compare is lane-dense
    V_pad = _round_up(max(V, 128), 128)
    emb = jnp.pad(params['embedding'], ((0, V_pad - V), (0, 0))).astype(compute_dtype)

    # FC weight padded to 128 lanes (MXU operand only); the OUTPUT stays O wide.
    FCN = _round_up(max(O, 128), 128)
    wfc = jnp.pad(params['fc_w'].astype(compute_dtype), ((0, 0), (0, FCN - O)))
    bfc = jnp.pad(params['fc_b'].astype(jnp.float32), ((0, 0), (0, FCN - O)))

    inputs = [tok_tm, mask, emb]
    in_specs = [
        pl.BlockSpec((T, TB, K), lambda g: (0, g, 0)),
        pl.BlockSpec((T, TB, 1), lambda g: (0, g, 0)),
        pl.BlockSpec(emb.shape, lambda g: (0, 0)),
    ]
    for (wih_t, whh_t, bias) in params['lstm']:
        for w, dt in ((wih_t, compute_dtype), (whh_t, compute_dtype),
                      (bias, jnp.float32)):
            w = w.astype(dt)
            inputs.append(w)
            in_specs.append(pl.BlockSpec(w.shape, lambda g: (0, 0)))
    inputs += [wfc, bfc]
    in_specs += [pl.BlockSpec(wfc.shape, lambda g: (0, 0)),
                 pl.BlockSpec(bfc.shape, lambda g: (0, 0))]

    kernel = functools.partial(_embed_lstm_fc_kernel, num_layers, H, compute_dtype)
    # TODO(synk): for very large T on v7x (64 MiB VMEM), time-chunk the hoisted
    # input projection (gx) with pltpu.emit_pipeline instead of materializing all
    # T steps, and use pipeline_mode=pl.Buffered(1) on the big blocks when the
    # grid has a single block (unused second buffers waste VMEM).
    out_tm = pl.pallas_call(
        kernel,
        out_shape=jax.ShapeDtypeStruct((T, B_pad, O), jnp.float32),
        grid=(B_pad // TB,),
        in_specs=in_specs,
        out_specs=pl.BlockSpec((T, TB, O), lambda g: (0, g, 0)),
        scratch_shapes=[
            pltpu.VMEM((T, TB, 4 * H), compute_dtype),   # hoisted input projection
            pltpu.VMEM((T, TB, H), compute_dtype),       # per-layer output sequence
        ],
        compiler_params=pltpu.CompilerParams(
            dimension_semantics=("parallel",),           # megacore over batch blocks
            vmem_limit_bytes=64 * 1024 * 1024),
    )(*inputs)

    out = jnp.transpose(out_tm, (1, 0, 2))[:B]           # tiny (T, B_pad, O) tensor
    return out, lengths                                  # len_batch_re == len_batch


# -----------------------------------------------------------------------------
# Deterministic parameter init (shapes from the PyTorch __init__)
# -----------------------------------------------------------------------------
def init_params(key, vocab_size, embedding_dim, hidden_dim, output_dim, num_layers):
    n_keys = 1 + 4 * num_layers + 2
    keys = jax.random.split(key, n_keys)
    scale = 0.1
    ki = 0

    emb = jax.random.normal(keys[ki], (vocab_size, embedding_dim), jnp.float32) * scale
    emb = emb.at[0].set(0.0)   # padding_idx=0
    ki += 1

    lstm = []
    for layer in range(num_layers):
        in_dim = embedding_dim if layer == 0 else hidden_dim
        w_ih = jax.random.normal(keys[ki], (4 * hidden_dim, in_dim), jnp.float32) * scale; ki += 1
        w_hh = jax.random.normal(keys[ki], (4 * hidden_dim, hidden_dim), jnp.float32) * scale; ki += 1
        b_ih = jax.random.normal(keys[ki], (4 * hidden_dim,), jnp.float32) * scale; ki += 1
        b_hh = jax.random.normal(keys[ki], (4 * hidden_dim,), jnp.float32) * scale; ki += 1
        lstm.append((w_ih.T, w_hh.T, (b_ih + b_hh).reshape(1, 4 * hidden_dim)))

    fc_w = jax.random.normal(keys[ki], (output_dim, hidden_dim), jnp.float32) * scale; ki += 1
    fc_b = jax.random.normal(keys[ki], (output_dim,), jnp.float32)

    return {'embedding': emb, 'lstm': lstm,
            'fc_w': fc_w.T, 'fc_b': fc_b.reshape(1, output_dim)}


# -----------------------------------------------------------------------------
# Pure-JAX f32 reference (for the correctness check)
# -----------------------------------------------------------------------------
def reference_forward(params, x_tokens, lengths):
    emb = jnp.take(params['embedding'], x_tokens, axis=0).mean(axis=2)   # (B, T, E)
    B, T, _ = emb.shape
    H = params['lstm'][0][1].shape[0]
    x = emb
    for (wih_t, whh_t, b) in params['lstm']:
        def step(carry, x_t):
            h, c = carry
            g = x_t @ wih_t + h @ whh_t + b[0]
            i = jax.nn.sigmoid(g[:, 0:H])
            f = jax.nn.sigmoid(g[:, H:2 * H])
            gg = jnp.tanh(g[:, 2 * H:3 * H])
            o = jax.nn.sigmoid(g[:, 3 * H:4 * H])
            c = f * c + i * gg
            h = o * jnp.tanh(c)
            return (h, c), h
        (_, _), ys = lax.scan(step,
                              (jnp.zeros((B, H), jnp.float32),
                               jnp.zeros((B, H), jnp.float32)),
                              jnp.transpose(x, (1, 0, 2)))
        x = jnp.transpose(ys, (1, 0, 2))
    mask = (jnp.arange(T)[None, :, None] < lengths[:, None, None]).astype(x.dtype)
    x = x * mask
    return x @ params['fc_w'] + params['fc_b'][0]


# -----------------------------------------------------------------------------
if __name__ == "__main__":
    # small shapes consistent with the module
    B, T, K = 2, 8, 4          # batch, max seq len, tokens per timestep
    VOCAB, E, H, O = 50, 32, 32, 1
    NUM_LAYERS = 2

    key = jax.random.PRNGKey(0)
    k_tok, k_par = jax.random.split(key)

    x_tokens = jax.random.randint(k_tok, (B, T, K), 1, VOCAB, dtype=jnp.int32)
    len_batch = jnp.array([8, 5], dtype=jnp.int32)   # valid lengths per batch element

    params = init_params(k_par, VOCAB, E, H, O, NUM_LAYERS)

    # pad_packed_sequence pads only up to max(len_batch)
    T_out = int(jnp.max(len_batch))
    ref = reference_forward(params, x_tokens, len_batch)[:, :T_out, :]

    # strict correctness check: f32 kernel path vs f32 reference (tight tol)
    out_f32, len_re = propensity_lstm_forward(params, x_tokens, len_batch,
                                              compute_dtype=jnp.float32)
    out_f32 = jax.block_until_ready(out_f32)[:, :T_out, :]
    assert out_f32.shape == (B, T_out, O)
    err32 = float(jnp.max(jnp.abs(out_f32 - ref)))
    assert jnp.allclose(out_f32, ref, atol=1e-4, rtol=1e-4), err32

    # performance path: bf16 weights / activations, f32 state & accumulation
    out_bf16, _ = propensity_lstm_forward(params, x_tokens, len_batch,
                                          compute_dtype=jnp.bfloat16)
    out_bf16 = jax.block_until_ready(out_bf16)[:, :T_out, :]
    errbf = float(jnp.max(jnp.abs(out_bf16 - ref)))
    assert jnp.allclose(out_bf16, ref, atol=5e-2, rtol=5e-2), errbf

    assert jnp.array_equal(len_re, len_batch)
    print("KERNEL_OK")
</pallas_src>

<mosaic_0001>
module attributes {stable_mosaic.version = 11 : i64} {
  func.func @_embed_lstm_fc_kernel(%arg0: i32, %arg1: memref<8x8x4xi32, #tpu.memory_space<vmem>>, %arg2: memref<8x8x1xf32, #tpu.memory_space<vmem>>, %arg3: memref<128x32xf32, #tpu.memory_space<vmem>>, %arg4: memref<32x128xf32, #tpu.memory_space<vmem>>, %arg5: memref<32x128xf32, #tpu.memory_space<vmem>>, %arg6: memref<1x128xf32, #tpu.memory_space<vmem>>, %arg7: memref<32x128xf32, #tpu.memory_space<vmem>>, %arg8: memref<32x128xf32, #tpu.memory_space<vmem>>, %arg9: memref<1x128xf32, #tpu.memory_space<vmem>>, %arg10: memref<32x128xf32, #tpu.memory_space<vmem>>, %arg11: memref<1x128xf32, #tpu.memory_space<vmem>>, %arg12: memref<8x8x1xf32, #tpu.memory_space<vmem>>, %arg13: memref<8x8x128xf32, #tpu.memory_space<vmem>>, %arg14: memref<8x8x32xf32, #tpu.memory_space<vmem>>) attributes {dimension_semantics = [#tpu.dimension_semantics<parallel>], iteration_bounds = array<i64: 1>, scalar_prefetch = 0 : i64, scratch_operands = 2 : i64, tpu.core_type = #tpu.core_type<tc>, window_params = [{transform_indices = @transform_0, window_bounds = array<i64: 8, 8, 4>}, {transform_indices = @transform_1, window_bounds = array<i64: 8, 8, 1>}, {pipeline_mode = #tpu.pipeline_mode<synchronous>, transform_indices = @transform_2, window_bounds = array<i64: 128, 32>}, {pipeline_mode = #tpu.pipeline_mode<synchronous>, transform_indices = @transform_3, window_bounds = array<i64: 32, 128>}, {pipeline_mode = #tpu.pipeline_mode<synchronous>, transform_indices = @transform_4, window_bounds = array<i64: 32, 128>}, {pipeline_mode = #tpu.pipeline_mode<synchronous>, transform_indices = @transform_5, window_bounds = array<i64: 1, 128>}, {pipeline_mode = #tpu.pipeline_mode<synchronous>, transform_indices = @transform_6, window_bounds = array<i64: 32, 128>}, {pipeline_mode = #tpu.pipeline_mode<synchronous>, transform_indices = @transform_7, window_bounds = array<i64: 32, 128>}, {pipeline_mode = #tpu.pipeline_mode<synchronous>, transform_indices = @transform_8, window_bounds = array<i64: 1, 128>}, {pipeline_mode = #tpu.pipeline_mode<synchronous>, transform_indices = @transform_9, window_bounds = array<i64: 32, 128>}, {pipeline_mode = #tpu.pipeline_mode<synchronous>, transform_indices = @transform_10, window_bounds = array<i64: 1, 128>}, {transform_indices = @transform_11, window_bounds = array<i64: 8, 8, 1>}]} {
    %c0 = arith.constant 0 : index
    %c0_0 = arith.constant 0 : index
    %c0_1 = arith.constant 0 : index
    %0 = vector.load %arg1[%c0, %c0_0, %c0_1] : memref<8x8x4xi32, #tpu.memory_space<vmem>>, vector<8x8x4xi32>
    %1 = vector.shape_cast %0 : vector<8x8x4xi32> to vector<64x4xi32>
    %2 = tpu.iota {dimensions = array<i32: 1>} : vector<64x128xi32>
    %cst = arith.constant 0.000000e+00 : f32
    %3 = vector.broadcast %cst : f32 to vector<64x128xf32>
    %4 = vector.extract_strided_slice %1 {offsets = [0, 0], sizes = [64, 1], strides = [1, 1]} : vector<64x4xi32> to vector<64x1xi32>
    %5 = vector.broadcast %4 : vector<64x1xi32> to vector<64x128xi32>
    %6 = arith.cmpi eq, %5, %2 : vector<64x128xi32>
    %7 = arith.extui %6 : vector<64x128xi1> to vector<64x128xi32>
    %8 = arith.sitofp %7 : vector<64x128xi32> to vector<64x128xf32>
    %9 = arith.addf %3, %8 : vector<64x128xf32>
    %10 = vector.extract_strided_slice %1 {offsets = [0, 1], sizes = [64, 1], strides = [1, 1]} : vector<64x4xi32> to vector<64x1xi32>
    %11 = vector.broadcast %10 : vector<64x1xi32> to vector<64x128xi32>
    %12 = arith.cmpi eq, %11, %2 : vector<64x128xi32>
    %13 = arith.extui %12 : vector<64x128xi1> to vector<64x128xi32>
    %14 = arith.sitofp %13 : vector<64x128xi32> to vector<64x128xf32>
    %15 = arith.addf %9, %14 : vector<64x128xf32>
    %16 = vector.extract_strided_slice %1 {offsets = [0, 2], sizes = [64, 1], strides = [1, 1]} : vector<64x4xi32> to vector<64x1xi32>
    %17 = vector.broadcast %16 : vector<64x1xi32> to vector<64x128xi32>
    %18 = arith.cmpi eq, %17, %2 : vector<64x128xi32>
    %19 = arith.extui %18 : vector<64x128xi1> to vector<64x128xi32>
    %20 = arith.sitofp %19 : vector<64x128xi32> to vector<64x128xf32>
    %21 = arith.addf %15, %20 : vector<64x128xf32>
    %22 = vector.extract_strided_slice %1 {offsets = [0, 3], sizes = [64, 1], strides = [1, 1]} : vector<64x4xi32> to vector<64x1xi32>
    %23 = vector.broadcast %22 : vector<64x1xi32> to vector<64x128xi32>
    %24 = arith.cmpi eq, %23, %2 : vector<64x128xi32>
    %25 = arith.extui %24 : vector<64x128xi1> to vector<64x128xi32>
    %26 = arith.sitofp %25 : vector<64x128xi32> to vector<64x128xf32>
    %27 = arith.addf %21, %26 : vector<64x128xf32>
    %cst_2 = arith.constant 2.500000e-01 : f32
    %28 = vector.broadcast %cst_2 : f32 to vector<64x128xf32>
    %29 = arith.mulf %27, %28 : vector<64x128xf32>
    %c0_3 = arith.constant 0 : index
    %c0_4 = arith.constant 0 : index
    %30 = vector.load %arg3[%c0_3, %c0_4] : memref<128x32xf32, #tpu.memory_space<vmem>>, vector<128x32xf32>
    %cst_5 = arith.constant dense<0.000000e+00> : vector<64x32xf32>
    %31 = tpu.matmul %29, %30, %cst_5 {dimension_numbers = #tpu.dot_dimension_numbers<[1], [0], [0], [1], [0, 0, 1, 1], [], []>} : vector<64x128xf32>, vector<128x32xf32>, vector<64x32xf32> -> vector<64x32xf32>
    %c0_6 = arith.constant 0 : index
    %c0_7 = arith.constant 0 : index
    %32 = vector.load %arg4[%c0_6, %c0_7] : memref<32x128xf32, #tpu.memory_space<vmem>>, vector<32x128xf32>
    %cst_8 = arith.constant dense<0.000000e+00> : vector<64x128xf32>
    %33 = tpu.matmul %31, %32, %cst_8 {dimension_numbers = #tpu.dot_dimension_numbers<[1], [0], [0], [1], [0, 0, 1, 1], [], []>} : vector<64x32xf32>, vector<32x128xf32>, vector<64x128xf32> -> vector<64x128xf32>
    %c0_9 = arith.constant 0 : index
    %c0_10 = arith.constant 0 : index
    %34 = vector.load %arg6[%c0_9, %c0_10] : memref<1x128xf32, #tpu.memory_space<vmem>>, vector<1x128xf32>
    %35 = vector.broadcast %34 : vector<1x128xf32> to vector<64x128xf32>
    %36 = arith.addf %33, %35 : vector<64x128xf32>
    %37 = vector.shape_cast %36 : vector<64x128xf32> to vector<8x8x128xf32>
    %c0_11 = arith.constant 0 : index
    %c0_12 = arith.constant 0 : index
    %c0_13 = arith.constant 0 : index
    %38 = vector.load %arg13[%c0_11, %c0_12, %c0_13] : memref<8x8x128xf32, #tpu.memory_space<vmem>>, vector<8x8x128xf32>
    tpu.vector_store %arg13[%c0_11, %c0_12, %c0_13], %37 {strides = array<i32>} : memref<8x8x128xf32, #tpu.memory_space<vmem>>, vector<8x8x128xf32>,
    %c0_14 = arith.constant 0 : index
    %c0_15 = arith.constant 0 : index
    %39 = vector.load %arg5[%c0_14, %c0_15] : memref<32x128xf32, #tpu.memory_space<vmem>>, vector<32x128xf32>
    %cst_16 = arith.constant 0.000000e+00 : f32
    %40 = vector.broadcast %cst_16 : f32 to vector<8x32xf32>
    %c0_i32 = arith.constant 0 : i32
    %41 = arith.index_cast %c0_i32 : i32 to index
    %c0_17 = arith.constant 0 : index
    %c0_18 = arith.constant 0 : index
    %42 = vector.load %arg13[%41, %c0_17, %c0_18] : memref<8x8x128xf32, #tpu.memory_space<vmem>>, vector<1x8x128xf32>
    %43 = vector.shape_cast %42 : vector<1x8x128xf32> to vector<8x128xf32>
    %cst_19 = arith.constant dense<0.000000e+00> : vector<8x128xf32>
    %44 = tpu.matmul %40, %39, %cst_19 {dimension_numbers = #tpu.dot_dimension_numbers<[1], [0], [0], [1], [0, 0, 1, 1], [], []>} : vector<8x32xf32>, vector<32x128xf32>, vector<8x128xf32> -> vector<8x128xf32>
    %45 = arith.addf %43, %44 : vector<8x128xf32>
    %46 = arith.negf %45 : vector<8x128xf32>
    %47 = math.exp %46 : vector<8x128xf32>
    %cst_20 = arith.constant 1.000000e+00 : f32
    %48 = vector.broadcast %cst_20 : f32 to vector<8x128xf32>
    %49 = arith.addf %48, %47 : vector<8x128xf32>
    %50 = arith.divf %48, %49 : vector<8x128xf32>
    %51 = math.tanh %45 : vector<8x128xf32>
    %52 = vector.extract_strided_slice %50 {offsets = [0, 0], sizes = [8, 32], strides = [1, 1]} : vector<8x128xf32> to vector<8x32xf32>
    %53 = vector.extract_strided_slice %50 {offsets = [0, 32], sizes = [8, 32], strides = [1, 1]} : vector<8x128xf32> to vector<8x32xf32>
    %54 = vector.extract_strided_slice %50 {offsets = [0, 96], sizes = [8, 32], strides = [1, 1]} : vector<8x128xf32> to vector<8x32xf32>
    %55 = vector.extract_strided_slice %51 {offsets = [0, 64], sizes = [8, 32], strides = [1, 1]} : vector<8x128xf32> to vector<8x32xf32>
    %56 = arith.mulf %53, %40 : vector<8x32xf32>
    %57 = arith.mulf %52, %55 : vector<8x32xf32>
    %58 = arith.addf %56, %57 : vector<8x32xf32>
    %59 = math.tanh %58 : vector<8x32xf32>
    %60 = arith.mulf %54, %59 : vector<8x32xf32>
    %61 = arith.index_cast %c0_i32 : i32 to index
    %c0_21 = arith.constant 0 : index
    %c0_22 = arith.constant 0 : index
    %62 = vector.load %arg14[%61, %c0_21, %c0_22] : memref<8x8x32xf32, #tpu.memory_space<vmem>>, vector<1x8x32xf32>
    %63 = vector.shape_cast %62 : vector<1x8x32xf32> to vector<8x32xf32>
    %64 = vector.shape_cast %60 : vector<8x32xf32> to vector<1x8x32xf32>
    tpu.vector_store %arg14[%61, %c0_21, %c0_22], %64 {strides = array<i32>} : memref<8x8x32xf32, #tpu.memory_space<vmem>>, vector<1x8x32xf32>,
    %c1_i32 = arith.constant 1 : i32
    %65 = arith.index_cast %c1_i32 : i32 to index
    %c0_23 = arith.constant 0 : index
    %c0_24 = arith.constant 0 : index
    %66 = vector.load %arg13[%65, %c0_23, %c0_24] : memref<8x8x128xf32, #tpu.memory_space<vmem>>, vector<1x8x128xf32>
    %67 = vector.shape_cast %66 : vector<1x8x128xf32> to vector<8x128xf32>
    %cst_25 = arith.constant dense<0.000000e+00> : vector<8x128xf32>
    %68 = tpu.matmul %60, %39, %cst_25 {dimension_numbers = #tpu.dot_dimension_numbers<[1], [0], [0], [1], [0, 0, 1, 1], [], []>} : vector<8x32xf32>, vector<32x128xf32>, vector<8x128xf32> -> vector<8x128xf32>
    %69 = arith.addf %67, %68 : vector<8x128xf32>
    %70 = arith.negf %69 : vector<8x128xf32>
    %71 = math.exp %70 : vector<8x128xf32>
    %cst_26 = arith.constant 1.000000e+00 : f32
    %72 = vector.broadcast %cst_26 : f32 to vector<8x128xf32>
    %73 = arith.addf %72, %71 : vector<8x128xf32>
    %74 = arith.divf %72, %73 : vector<8x128xf32>
    %75 = math.tanh %69 : vector<8x128xf32>
    %76 = vector.extract_strided_slice %74 {offsets = [0, 0], sizes = [8, 32], strides = [1, 1]} : vector<8x128xf32> to vector<8x32xf32>
    %77 = vector.extract_strided_slice %74 {offsets = [0, 32], sizes = [8, 32], strides = [1, 1]} : vector<8x128xf32> to vector<8x32xf32>
    %78 = vector.extract_strided_slice %74 {offsets = [0, 96], sizes = [8, 32], strides = [1, 1]} : vector<8x128xf32> to vector<8x32xf32>
    %79 = vector.extract_strided_slice %75 {offsets = [0, 64], sizes = [8, 32], strides = [1, 1]} : vector<8x128xf32> to vector<8x32xf32>
    %80 = arith.mulf %77, %58 : vector<8x32xf32>
    %81 = arith.mulf %76, %79 : vector<8x32xf32>
    %82 = arith.addf %80, %81 : vector<8x32xf32>
    %83 = math.tanh %82 : vector<8x32xf32>
    %84 = arith.mulf %78, %83 : vector<8x32xf32>
    %85 = arith.index_cast %c1_i32 : i32 to index
    %c0_27 = arith.constant 0 : index
    %c0_28 = arith.constant 0 : index
    %86 = vector.load %arg14[%85, %c0_27, %c0_28] : memref<8x8x32xf32, #tpu.memory_space<vmem>>, vector<1x8x32xf32>
    %87 = vector.shape_cast %86 : vector<1x8x32xf32> to vector<8x32xf32>
    %88 = vector.shape_cast %84 : vector<8x32xf32> to vector<1x8x32xf32>
    tpu.vector_store %arg14[%85, %c0_27, %c0_28], %88 {strides = array<i32>} : memref<8x8x32xf32, #tpu.memory_space<vmem>>, vector<1x8x32xf32>,
    %c2_i32 = arith.constant 2 : i32
    %89 = arith.index_cast %c2_i32 : i32 to index
    %c0_29 = arith.constant 0 : index
    %c0_30 = arith.constant 0 : index
    %90 = vector.load %arg13[%89, %c0_29, %c0_30] : memref<8x8x128xf32, #tpu.memory_space<vmem>>, vector<1x8x128xf32>
    %91 = vector.shape_cast %90 : vector<1x8x128xf32> to vector<8x128xf32>
    %cst_31 = arith.constant dense<0.000000e+00> : vector<8x128xf32>
    %92 = tpu.matmul %84, %39, %cst_31 {dimension_numbers = #tpu.dot_dimension_numbers<[1], [0], [0], [1], [0, 0, 1, 1], [], []>} : vector<8x32xf32>, vector<32x128xf32>, vector<8x128xf32> -> vector<8x128xf32>
    %93 = arith.addf %91, %92 : vector<8x128xf32>
    %94 = arith.negf %93 : vector<8x128xf32>
    %95 = math.exp %94 : vector<8x128xf32>
    %cst_32 = arith.constant 1.000000e+00 : f32
    %96 = vector.broadcast %cst_32 : f32 to vector<8x128xf32>
    %97 = arith.addf %96, %95 : vector<8x128xf32>
    %98 = arith.divf %96, %97 : vector<8x128xf32>
    %99 = math.tanh %93 : vector<8x128xf32>
    %100 = vector.extract_strided_slice %98 {offsets = [0, 0], sizes = [8, 32], strides = [1, 1]} : vector<8x128xf32> to vector<8x32xf32>
    %101 = vector.extract_strided_slice %98 {offsets = [0, 32], sizes = [8, 32], strides = [1, 1]} : vector<8x128xf32> to vector<8x32xf32>
    %102 = vector.extract_strided_slice %98 {offsets = [0, 96], sizes = [8, 32], strides = [1, 1]} : vector<8x128xf32> to vector<8x32xf32>
    %103 = vector.extract_strided_slice %99 {offsets = [0, 64], sizes = [8, 32], strides = [1, 1]} : vector<8x128xf32> to vector<8x32xf32>
    %104 = arith.mulf %101, %82 : vector<8x32xf32>
    %105 = arith.mulf %100, %103 : vector<8x32xf32>
    %106 = arith.addf %104, %105 : vector<8x32xf32>
    %107 = math.tanh %106 : vector<8x32xf32>
    %108 = arith.mulf %102, %107 : vector<8x32xf32>
    %109 = arith.index_cast %c2_i32 : i32 to index
    %c0_33 = arith.constant 0 : index
    %c0_34 = arith.constant 0 : index
    %110 = vector.load %arg14[%109, %c0_33, %c0_34] : memref<8x8x32xf32, #tpu.memory_space<vmem>>, vector<1x8x32xf32>
    %111 = vector.shape_cast %110 : vector<1x8x32xf32> to vector<8x32xf32>
    %112 = vector.shape_cast %108 : vector<8x32xf32> to vector<1x8x32xf32>
    tpu.vector_store %arg14[%109, %c0_33, %c0_34], %112 {strides = array<i32>} : memref<8x8x32xf32, #tpu.memory_space<vmem>>, vector<1x8x32xf32>,
    %c3_i32 = arith.constant 3 : i32
    %113 = arith.index_cast %c3_i32 : i32 to index
    %c0_35 = arith.constant 0 : index
    %c0_36 = arith.constant 0 : index
    %114 = vector.load %arg13[%113, %c0_35, %c0_36] : memref<8x8x128xf32, #tpu.memory_space<vmem>>, vector<1x8x128xf32>
    %115 = vector.shape_cast %114 : vector<1x8x128xf32> to vector<8x128xf32>
    %cst_37 = arith.constant dense<0.000000e+00> : vector<8x128xf32>
    %116 = tpu.matmul %108, %39, %cst_37 {dimension_numbers = #tpu.dot_dimension_numbers<[1], [0], [0], [1], [0, 0, 1, 1], [], []>} : vector<8x32xf32>, vector<32x128xf32>, vector<8x128xf32> -> vector<8x128xf32>
    %117 = arith.addf %115, %116 : vector<8x128xf32>
    %118 = arith.negf %117 : vector<8x128xf32>
    %119 = math.exp %118 : vector<8x128xf32>
    %cst_38 = arith.constant 1.000000e+00 : f32
    %120 = vector.broadcast %cst_38 : f32 to vector<8x128xf32>
    %121 = arith.addf %120, %119 : vector<8x128xf32>
    %122 = arith.divf %120, %121 : vector<8x128xf32>
    %123 = math.tanh %117 : vector<8x128xf32>
    %124 = vector.extract_strided_slice %122 {offsets = [0, 0], sizes = [8, 32], strides = [1, 1]} : vector<8x128xf32> to vector<8x32xf32>
    %125 = vector.extract_strided_slice %122 {offsets = [0, 32], sizes = [8, 32], strides = [1, 1]} : vector<8x128xf32> to vector<8x32xf32>
    %126 = vector.extract_strided_slice %122 {offsets = [0, 96], sizes = [8, 32], strides = [1, 1]} : vector<8x128xf32> to vector<8x32xf32>
    %127 = vector.extract_strided_slice %123 {offsets = [0, 64], sizes = [8, 32], strides = [1, 1]} : vector<8x128xf32> to vector<8x32xf32>
    %128 = arith.mulf %125, %106 : vector<8x32xf32>
    %129 = arith.mulf %124, %127 : vector<8x32xf32>
    %130 = arith.addf %128, %129 : vector<8x32xf32>
    %131 = math.tanh %130 : vector<8x32xf32>
    %132 = arith.mulf %126, %131 : vector<8x32xf32>
    %133 = arith.index_cast %c3_i32 : i32 to index
    %c0_39 = arith.constant 0 : index
    %c0_40 = arith.constant 0 : index
    %134 = vector.load %arg14[%133, %c0_39, %c0_40] : memref<8x8x32xf32, #tpu.memory_space<vmem>>, vector<1x8x32xf32>
    %135 = vector.shape_cast %134 : vector<1x8x32xf32> to vector<8x32xf32>
    %136 = vector.shape_cast %132 : vector<8x32xf32> to vector<1x8x32xf32>
    tpu.vector_store %arg14[%133, %c0_39, %c0_40], %136 {strides = array<i32>} : memref<8x8x32xf32, #tpu.memory_space<vmem>>, vector<1x8x32xf32>,
    %c4_i32 = arith.constant 4 : i32
    %137 = arith.index_cast %c4_i32 : i32 to index
    %c0_41 = arith.constant 0 : index
    %c0_42 = arith.constant 0 : index
    %138 = vector.load %arg13[%137, %c0_41, %c0_42] : memref<8x8x128xf32, #tpu.memory_space<vmem>>, vector<1x8x128xf32>
    %139 = vector.shape_cast %138 : vector<1x8x128xf32> to vector<8x128xf32>
    %cst_43 = arith.constant dense<0.000000e+00> : vector<8x128xf32>
    %140 = tpu.matmul %132, %39, %cst_43 {dimension_numbers = #tpu.dot_dimension_numbers<[1], [0], [0], [1], [0, 0, 1, 1], [], []>} : vector<8x32xf32>, vector<32x128xf32>, vector<8x128xf32> -> vector<8x128xf32>
    %141 = arith.addf %139, %140 : vector<8x128xf32>
    %142 = arith.negf %141 : vector<8x128xf32>
    %143 = math.exp %142 : vector<8x128xf32>
    %cst_44 = arith.constant 1.000000e+00 : f32
    %144 = vector.broadcast %cst_44 : f32 to vector<8x128xf32>
    %145 = arith.addf %144, %143 : vector<8x128xf32>
    %146 = arith.divf %144, %145 : vector<8x128xf32>
    %147 = math.tanh %141 : vector<8x128xf32>
    %148 = vector.extract_strided_slice %146 {offsets = [0, 0], sizes = [8, 32], strides = [1, 1]} : vector<8x128xf32> to vector<8x32xf32>
    %149 = vector.extract_strided_slice %146 {offsets = [0, 32], sizes = [8, 32], strides = [1, 1]} : vector<8x128xf32> to vector<8x32xf32>
    %150 = vector.extract_strided_slice %146 {offsets = [0, 96], sizes = [8, 32], strides = [1, 1]} : vector<8x128xf32> to vector<8x32xf32>
    %151 = vector.extract_strided_slice %147 {offsets = [0, 64], sizes = [8, 32], strides = [1, 1]} : vector<8x128xf32> to vector<8x32xf32>
    %152 = arith.mulf %149, %130 : vector<8x32xf32>
    %153 = arith.mulf %148, %151 : vector<8x32xf32>
    %154 = arith.addf %152, %153 : vector<8x32xf32>
    %155 = math.tanh %154 : vector<8x32xf32>
    %156 = arith.mulf %150, %155 : vector<8x32xf32>
    %157 = arith.index_cast %c4_i32 : i32 to index
    %c0_45 = arith.constant 0 : index
    %c0_46 = arith.constant 0 : index
    %158 = vector.load %arg14[%157, %c0_45, %c0_46] : memref<8x8x32xf32, #tpu.memory_space<vmem>>, vector<1x8x32xf32>
    %159 = vector.shape_cast %158 : vector<1x8x32xf32> to vector<8x32xf32>
    %160 = vector.shape_cast %156 : vector<8x32xf32> to vector<1x8x32xf32>
    tpu.vector_store %arg14[%157, %c0_45, %c0_46], %160 {strides = array<i32>} : memref<8x8x32xf32, #tpu.memory_space<vmem>>, vector<1x8x32xf32>,
    %c5_i32 = arith.constant 5 : i32
    %161 = arith.index_cast %c5_i32 : i32 to index
    %c0_47 = arith.constant 0 : index
    %c0_48 = arith.constant 0 : index
    %162 = vector.load %arg13[%161, %c0_47, %c0_48] : memref<8x8x128xf32, #tpu.memory_space<vmem>>, vector<1x8x128xf32>
    %163 = vector.shape_cast %162 : vector<1x8x128xf32> to vector<8x128xf32>
    %cst_49 = arith.constant dense<0.000000e+00> : vector<8x128xf32>
    %164 = tpu.matmul %156, %39, %cst_49 {dimension_numbers = #tpu.dot_dimension_numbers<[1], [0], [0], [1], [0, 0, 1, 1], [], []>} : vector<8x32xf32>, vector<32x128xf32>, vector<8x128xf32> -> vector<8x128xf32>
    %165 = arith.addf %163, %164 : vector<8x128xf32>
    %166 = arith.negf %165 : vector<8x128xf32>
    %167 = math.exp %166 : vector<8x128xf32>
    %cst_50 = arith.constant 1.000000e+00 : f32
    %168 = vector.broadcast %cst_50 : f32 to vector<8x128xf32>
    %169 = arith.addf %168, %167 : vector<8x128xf32>
    %170 = arith.divf %168, %169 : vector<8x128xf32>
    %171 = math.tanh %165 : vector<8x128xf32>
    %172 = vector.extract_strided_slice %170 {offsets = [0, 0], sizes = [8, 32], strides = [1, 1]} : vector<8x128xf32> to vector<8x32xf32>
    %173 = vector.extract_strided_slice %170 {offsets = [0, 32], sizes = [8, 32], strides = [1, 1]} : vector<8x128xf32> to vector<8x32xf32>
    %174 = vector.extract_strided_slice %170 {offsets = [0, 96], sizes = [8, 32], strides = [1, 1]} : vector<8x128xf32> to vector<8x32xf32>
    %175 = vector.extract_strided_slice %171 {offsets = [0, 64], sizes = [8, 32], strides = [1, 1]} : vector<8x128xf32> to vector<8x32xf32>
    %176 = arith.mulf %173, %154 : vector<8x32xf32>
    %177 = arith.mulf %172, %175 : vector<8x32xf32>
    %178 = arith.addf %176, %177 : vector<8x32xf32>
    %179 = math.tanh %178 : vector<8x32xf32>
    %180 = arith.mulf %174, %179 : vector<8x32xf32>
    %181 = arith.index_cast %c5_i32 : i32 to index
    %c0_51 = arith.constant 0 : index
    %c0_52 = arith.constant 0 : index
    %182 = vector.load %arg14[%181, %c0_51, %c0_52] : memref<8x8x32xf32, #tpu.memory_space<vmem>>, vector<1x8x32xf32>
    %183 = vector.shape_cast %182 : vector<1x8x32xf32> to vector<8x32xf32>
    %184 = vector.shape_cast %180 : vector<8x32xf32> to vector<1x8x32xf32>
    tpu.vector_store %arg14[%181, %c0_51, %c0_52], %184 {strides = array<i32>} : memref<8x8x32xf32, #tpu.memory_space<vmem>>, vector<1x8x32xf32>,
    %c6_i32 = arith.constant 6 : i32
    %185 = arith.index_cast %c6_i32 : i32 to index
    %c0_53 = arith.constant 0 : index
    %c0_54 = arith.constant 0 : index
    %186 = vector.load %arg13[%185, %c0_53, %c0_54] : memref<8x8x128xf32, #tpu.memory_space<vmem>>, vector<1x8x128xf32>
    %187 = vector.shape_cast %186 : vector<1x8x128xf32> to vector<8x128xf32>
    %cst_55 = arith.constant dense<0.000000e+00> : vector<8x128xf32>
    %188 = tpu.matmul %180, %39, %cst_55 {dimension_numbers = #tpu.dot_dimension_numbers<[1], [0], [0], [1], [0, 0, 1, 1], [], []>} : vector<8x32xf32>, vector<32x128xf32>, vector<8x128xf32> -> vector<8x128xf32>
    %189 = arith.addf %187, %188 : vector<8x128xf32>
    %190 = arith.negf %189 : vector<8x128xf32>
    %191 = math.exp %190 : vector<8x128xf32>
    %cst_56 = arith.constant 1.000000e+00 : f32
    %192 = vector.broadcast %cst_56 : f32 to vector<8x128xf32>
    %193 = arith.addf %192, %191 : vector<8x128xf32>
    %194 = arith.divf %192, %193 : vector<8x128xf32>
    %195 = math.tanh %189 : vector<8x128xf32>
    %196 = vector.extract_strided_slice %194 {offsets = [0, 0], sizes = [8, 32], strides = [1, 1]} : vector<8x128xf32> to vector<8x32xf32>
    %197 = vector.extract_strided_slice %194 {offsets = [0, 32], sizes = [8, 32], strides = [1, 1]} : vector<8x128xf32> to vector<8x32xf32>
    %198 = vector.extract_strided_slice %194 {offsets = [0, 96], sizes = [8, 32], strides = [1, 1]} : vector<8x128xf32> to vector<8x32xf32>
    %199 = vector.extract_strided_slice %195 {offsets = [0, 64], sizes = [8, 32], strides = [1, 1]} : vector<8x128xf32> to vector<8x32xf32>
    %200 = arith.mulf %197, %178 : vector<8x32xf32>
    %201 = arith.mulf %196, %199 : vector<8x32xf32>
    %202 = arith.addf %200, %201 : vector<8x32xf32>
    %203 = math.tanh %202 : vector<8x32xf32>
    %204 = arith.mulf %198, %203 : vector<8x32xf32>
    %205 = arith.index_cast %c6_i32 : i32 to index
    %c0_57 = arith.constant 0 : index
    %c0_58 = arith.constant 0 : index
    %206 = vector.load %arg14[%205, %c0_57, %c0_58] : memref<8x8x32xf32, #tpu.memory_space<vmem>>, vector<1x8x32xf32>
    %207 = vector.shape_cast %206 : vector<1x8x32xf32> to vector<8x32xf32>
    %208 = vector.shape_cast %204 : vector<8x32xf32> to vector<1x8x32xf32>
    tpu.vector_store %arg14[%205, %c0_57, %c0_58], %208 {strides = array<i32>} : memref<8x8x32xf32, #tpu.memory_space<vmem>>, vector<1x8x32xf32>,
    %c7_i32 = arith.constant 7 : i32
    %209 = arith.index_cast %c7_i32 : i32 to index
    %c0_59 = arith.constant 0 : index
    %c0_60 = arith.constant 0 : index
    %210 = vector.load %arg13[%209, %c0_59, %c0_60] : memref<8x8x128xf32, #tpu.memory_space<vmem>>, vector<1x8x128xf32>
    %211 = vector.shape_cast %210 : vector<1x8x128xf32> to vector<8x128xf32>
    %cst_61 = arith.constant dense<0.000000e+00> : vector<8x128xf32>
    %212 = tpu.matmul %204, %39, %cst_61 {dimension_numbers = #tpu.dot_dimension_numbers<[1], [0], [0], [1], [0, 0, 1, 1], [], []>} : vector<8x32xf32>, vector<32x128xf32>, vector<8x128xf32> -> vector<8x128xf32>
    %213 = arith.addf %211, %212 : vector<8x128xf32>
    %214 = arith.negf %213 : vector<8x128xf32>
    %215 = math.exp %214 : vector<8x128xf32>
    %cst_62 = arith.constant 1.000000e+00 : f32
    %216 = vector.broadcast %cst_62 : f32 to vector<8x128xf32>
    %217 = arith.addf %216, %215 : vector<8x128xf32>
    %218 = arith.divf %216, %217 : vector<8x128xf32>
    %219 = math.tanh %213 : vector<8x128xf32>
    %220 = vector.extract_strided_slice %218 {offsets = [0, 0], sizes = [8, 32], strides = [1, 1]} : vector<8x128xf32> to vector<8x32xf32>
    %221 = vector.extract_strided_slice %218 {offsets = [0, 32], sizes = [8, 32], strides = [1, 1]} : vector<8x128xf32> to vector<8x32xf32>
    %222 = vector.extract_strided_slice %218 {offsets = [0, 96], sizes = [8, 32], strides = [1, 1]} : vector<8x128xf32> to vector<8x32xf32>
    %223 = vector.extract_strided_slice %219 {offsets = [0, 64], sizes = [8, 32], strides = [1, 1]} : vector<8x128xf32> to vector<8x32xf32>
    %224 = arith.mulf %221, %202 : vector<8x32xf32>
    %225 = arith.mulf %220, %223 : vector<8x32xf32>
    %226 = arith.addf %224, %225 : vector<8x32xf32>
    %227 = math.tanh %226 : vector<8x32xf32>
    %228 = arith.mulf %222, %227 : vector<8x32xf32>
    %229 = arith.index_cast %c7_i32 : i32 to index
    %c0_63 = arith.constant 0 : index
    %c0_64 = arith.constant 0 : index
    %230 = vector.load %arg14[%229, %c0_63, %c0_64] : memref<8x8x32xf32, #tpu.memory_space<vmem>>, vector<1x8x32xf32>
    %231 = vector.shape_cast %230 : vector<1x8x32xf32> to vector<8x32xf32>
    %232 = vector.shape_cast %228 : vector<8x32xf32> to vector<1x8x32xf32>
    tpu.vector_store %arg14[%229, %c0_63, %c0_64], %232 {strides = array<i32>} : memref<8x8x32xf32, #tpu.memory_space<vmem>>, vector<1x8x32xf32>,
    %c8_i32 = arith.constant 8 : i32
    %c0_65 = arith.constant 0 : index
    %c0_66 = arith.constant 0 : index
    %c0_67 = arith.constant 0 : index
    %233 = vector.load %arg14[%c0_65, %c0_66, %c0_67] : memref<8x8x32xf32, #tpu.memory_space<vmem>>, vector<8x8x32xf32>
    %234 = vector.shape_cast %233 : vector<8x8x32xf32> to vector<64x32xf32>
    %c0_68 = arith.constant 0 : index
    %c0_69 = arith.constant 0 : index
    %235 = vector.load %arg7[%c0_68, %c0_69] : memref<32x128xf32, #tpu.memory_space<vmem>>, vector<32x128xf32>
    %cst_70 = arith.constant dense<0.000000e+00> : vector<64x128xf32>
    %236 = tpu.matmul %234, %235, %cst_70 {dimension_numbers = #tpu.dot_dimension_numbers<[1], [0], [0], [1], [0, 0, 1, 1], [], []>} : vector<64x32xf32>, vector<32x128xf32>, vector<64x128xf32> -> vector<64x128xf32>
    %c0_71 = arith.constant 0 : index
    %c0_72 = arith.constant 0 : index
    %237 = vector.load %arg9[%c0_71, %c0_72] : memref<1x128xf32, #tpu.memory_space<vmem>>, vector<1x128xf32>
    %238 = vector.broadcast %237 : vector<1x128xf32> to vector<64x128xf32>
    %239 = arith.addf %236, %238 : vector<64x128xf32>
    %240 = vector.shape_cast %239 : vector<64x128xf32> to vector<8x8x128xf32>
    %c0_73 = arith.constant 0 : index
    %c0_74 = arith.constant 0 : index
    %c0_75 = arith.constant 0 : index
    %241 = vector.load %arg13[%c0_73, %c0_74, %c0_75] : memref<8x8x128xf32, #tpu.memory_space<vmem>>, vector<8x8x128xf32>
    tpu.vector_store %arg13[%c0_73, %c0_74, %c0_75], %240 {strides = array<i32>} : memref<8x8x128xf32, #tpu.memory_space<vmem>>, vector<8x8x128xf32>,
    %c0_76 = arith.constant 0 : index
    %c0_77 = arith.constant 0 : index
    %242 = vector.load %arg8[%c0_76, %c0_77] : memref<32x128xf32, #tpu.memory_space<vmem>>, vector<32x128xf32>
    %cst_78 = arith.constant 0.000000e+00 : f32
    %243 = vector.broadcast %cst_78 : f32 to vector<8x32xf32>
    %c0_i32_79 = arith.constant 0 : i32
    %244 = arith.index_cast %c0_i32_79 : i32 to index
    %c0_80 = arith.constant 0 : index
    %c0_81 = arith.constant 0 : index
    %245 = vector.load %arg13[%244, %c0_80, %c0_81] : memref<8x8x128xf32, #tpu.memory_space<vmem>>, vector<1x8x128xf32>
    %246 = vector.shape_cast %245 : vector<1x8x128xf32> to vector<8x128xf32>
    %cst_82 = arith.constant dense<0.000000e+00> : vector<8x128xf32>
    %247 = tpu.matmul %243, %242, %cst_82 {dimension_numbers = #tpu.dot_dimension_numbers<[1], [0], [0], [1], [0, 0, 1, 1], [], []>} : vector<8x32xf32>, vector<32x128xf32>, vector<8x128xf32> -> vector<8x128xf32>
    %248 = arith.addf %246, %247 : vector<8x128xf32>
    %249 = arith.negf %248 : vector<8x128xf32>
    %250 = math.exp %249 : vector<8x128xf32>
    %cst_83 = arith.constant 1.000000e+00 : f32
    %251 = vector.broadcast %cst_83 : f32 to vector<8x128xf32>
    %252 = arith.addf %251, %250 : vector<8x128xf32>
    %253 = arith.divf %251, %252 : vector<8x128xf32>
    %254 = math.tanh %248 : vector<8x128xf32>
    %255 = vector.extract_strided_slice %253 {offsets = [0, 0], sizes = [8, 32], strides = [1, 1]} : vector<8x128xf32> to vector<8x32xf32>
    %256 = vector.extract_strided_slice %253 {offsets = [0, 32], sizes = [8, 32], strides = [1, 1]} : vector<8x128xf32> to vector<8x32xf32>
    %257 = vector.extract_strided_slice %253 {offsets = [0, 96], sizes = [8, 32], strides = [1, 1]} : vector<8x128xf32> to vector<8x32xf32>
    %258 = vector.extract_strided_slice %254 {offsets = [0, 64], sizes = [8, 32], strides = [1, 1]} : vector<8x128xf32> to vector<8x32xf32>
    %259 = arith.mulf %256, %243 : vector<8x32xf32>
    %260 = arith.mulf %255, %258 : vector<8x32xf32>
    %261 = arith.addf %259, %260 : vector<8x32xf32>
    %262 = math.tanh %261 : vector<8x32xf32>
    %263 = arith.mulf %257, %262 : vector<8x32xf32>
    %264 = arith.index_cast %c0_i32_79 : i32 to index
    %c0_84 = arith.constant 0 : index
    %c0_85 = arith.constant 0 : index
    %265 = vector.load %arg14[%264, %c0_84, %c0_85] : memref<8x8x32xf32, #tpu.memory_space<vmem>>, vector<1x8x32xf32>
    %266 = vector.shape_cast %265 : vector<1x8x32xf32> to vector<8x32xf32>
    %267 = vector.shape_cast %263 : vector<8x32xf32> to vector<1x8x32xf32>
    tpu.vector_store %arg14[%264, %c0_84, %c0_85], %267 {strides = array<i32>} : memref<8x8x32xf32, #tpu.memory_space<vmem>>, vector<1x8x32xf32>,
    %c1_i32_86 = arith.constant 1 : i32
    %268 = arith.index_cast %c1_i32_86 : i32 to index
    %c0_87 = arith.constant 0 : index
    %c0_88 = arith.constant 0 : index
    %269 = vector.load %arg13[%268, %c0_87, %c0_88] : memref<8x8x128xf32, #tpu.memory_space<vmem>>, vector<1x8x128xf32>
    %270 = vector.shape_cast %269 : vector<1x8x128xf32> to vector<8x128xf32>
    %cst_89 = arith.constant dense<0.000000e+00> : vector<8x128xf32>
    %271 = tpu.matmul %263, %242, %cst_89 {dimension_numbers = #tpu.dot_dimension_numbers<[1], [0], [0], [1], [0, 0, 1, 1], [], []>} : vector<8x32xf32>, vector<32x128xf32>, vector<8x128xf32> -> vector<8x128xf32>
    %272 = arith.addf %270, %271 : vector<8x128xf32>
    %273 = arith.negf %272 : vector<8x128xf32>
    %274 = math.exp %273 : vector<8x128xf32>
    %cst_90 = arith.constant 1.000000e+00 : f32
    %275 = vector.broadcast %cst_90 : f32 to vector<8x128xf32>
    %276 = arith.addf %275, %274 : vector<8x128xf32>
    %277 = arith.divf %275, %276 : vector<8x128xf32>
    %278 = math.tanh %272 : vector<8x128xf32>
    %279 = vector.extract_strided_slice %277 {offsets = [0, 0], sizes = [8, 32], strides = [1, 1]} : vector<8x128xf32> to vector<8x32xf32>
    %280 = vector.extract_strided_slice %277 {offsets = [0, 32], sizes = [8, 32], strides = [1, 1]} : vector<8x128xf32> to vector<8x32xf32>
    %281 = vector.extract_strided_slice %277 {offsets = [0, 96], sizes = [8, 32], strides = [1, 1]} : vector<8x128xf32> to vector<8x32xf32>
    %282 = vector.extract_strided_slice %278 {offsets = [0, 64], sizes = [8, 32], strides = [1, 1]} : vector<8x128xf32> to vector<8x32xf32>
    %283 = arith.mulf %280, %261 : vector<8x32xf32>
    %284 = arith.mulf %279, %282 : vector<8x32xf32>
    %285 = arith.addf %283, %284 : vector<8x32xf32>
    %286 = math.tanh %285 : vector<8x32xf32>
    %287 = arith.mulf %281, %286 : vector<8x32xf32>
    %288 = arith.index_cast %c1_i32_86 : i32 to index
    %c0_91 = arith.constant 0 : index
    %c0_92 = arith.constant 0 : index
    %289 = vector.load %arg14[%288, %c0_91, %c0_92] : memref<8x8x32xf32, #tpu.memory_space<vmem>>, vector<1x8x32xf32>
    %290 = vector.shape_cast %289 : vector<1x8x32xf32> to vector<8x32xf32>
    %291 = vector.shape_cast %287 : vector<8x32xf32> to vector<1x8x32xf32>
    tpu.vector_store %arg14[%288, %c0_91, %c0_92], %291 {strides = array<i32>} : memref<8x8x32xf32, #tpu.memory_space<vmem>>, vector<1x8x32xf32>,
    %c2_i32_93 = arith.constant 2 : i32
    %292 = arith.index_cast %c2_i32_93 : i32 to index
    %c0_94 = arith.constant 0 : index
    %c0_95 = arith.constant 0 : index
    %293 = vector.load %arg13[%292, %c0_94, %c0_95] : memref<8x8x128xf32, #tpu.memory_space<vmem>>, vector<1x8x128xf32>
    %294 = vector.shape_cast %293 : vector<1x8x128xf32> to vector<8x128xf32>
    %cst_96 = arith.constant dense<0.000000e+00> : vector<8x128xf32>
    %295 = tpu.matmul %287, %242, %cst_96 {dimension_numbers = #tpu.dot_dimension_numbers<[1], [0], [0], [1], [0, 0, 1, 1], [], []>} : vector<8x32xf32>, vector<32x128xf32>, vector<8x128xf32> -> vector<8x128xf32>
    %296 = arith.addf %294, %295 : vector<8x128xf32>
    %297 = arith.negf %296 : vector<8x128xf32>
    %298 = math.exp %297 : vector<8x128xf32>
    %cst_97 = arith.constant 1.000000e+00 : f32
    %299 = vector.broadcast %cst_97 : f32 to vector<8x128xf32>
    %300 = arith.addf %299, %298 : vector<8x128xf32>
    %301 = arith.divf %299, %300 : vector<8x128xf32>
    %302 = math.tanh %296 : vector<8x128xf32>
    %303 = vector.extract_strided_slice %301 {offsets = [0, 0], sizes = [8, 32], strides = [1, 1]} : vector<8x128xf32> to vector<8x32xf32>
    %304 = vector.extract_strided_slice %301 {offsets = [0, 32], sizes = [8, 32], strides = [1, 1]} : vector<8x128xf32> to vector<8x32xf32>
    %305 = vector.extract_strided_slice %301 {offsets = [0, 96], sizes = [8, 32], strides = [1, 1]} : vector<8x128xf32> to vector<8x32xf32>
    %306 = vector.extract_strided_slice %302 {offsets = [0, 64], sizes = [8, 32], strides = [1, 1]} : vector<8x128xf32> to vector<8x32xf32>
    %307 = arith.mulf %304, %285 : vector<8x32xf32>
    %308 = arith.mulf %303, %306 : vector<8x32xf32>
    %309 = arith.addf %307, %308 : vector<8x32xf32>
    %310 = math.tanh %309 : vector<8x32xf32>
    %311 = arith.mulf %305, %310 : vector<8x32xf32>
    %312 = arith.index_cast %c2_i32_93 : i32 to index
    %c0_98 = arith.constant 0 : index
    %c0_99 = arith.constant 0 : index
    %313 = vector.load %arg14[%312, %c0_98, %c0_99] : memref<8x8x32xf32, #tpu.memory_space<vmem>>, vector<1x8x32xf32>
    %314 = vector.shape_cast %313 : vector<1x8x32xf32> to vector<8x32xf32>
    %315 = vector.shape_cast %311 : vector<8x32xf32> to vector<1x8x32xf32>
    tpu.vector_store %arg14[%312, %c0_98, %c0_99], %315 {strides = array<i32>} : memref<8x8x32xf32, #tpu.memory_space<vmem>>, vector<1x8x32xf32>,
    %c3_i32_100 = arith.constant 3 : i32
    %316 = arith.index_cast %c3_i32_100 : i32 to index
    %c0_101 = arith.constant 0 : index
    %c0_102 = arith.constant 0 : index
    %317 = vector.load %arg13[%316, %c0_101, %c0_102] : memref<8x8x128xf32, #tpu.memory_space<vmem>>, vector<1x8x128xf32>
    %318 = vector.shape_cast %317 : vector<1x8x128xf32> to vector<8x128xf32>
    %cst_103 = arith.constant dense<0.000000e+00> : vector<8x128xf32>
    %319 = tpu.matmul %311, %242, %cst_103 {dimension_numbers = #tpu.dot_dimension_numbers<[1], [0], [0], [1], [0, 0, 1, 1], [], []>} : vector<8x32xf32>, vector<32x128xf32>, vector<8x128xf32> -> vector<8x128xf32>
    %320 = arith.addf %318, %319 : vector<8x128xf32>
    %321 = arith.negf %320 : vector<8x128xf32>
    %322 = math.exp %321 : vector<8x128xf32>
    %cst_104 = arith.constant 1.000000e+00 : f32
    %323 = vector.broadcast %cst_104 : f32 to vector<8x128xf32>
    %324 = arith.addf %323, %322 : vector<8x128xf32>
    %325 = arith.divf %323, %324 : vector<8x128xf32>
    %326 = math.tanh %320 : vector<8x128xf32>
    %327 = vector.extract_strided_slice %325 {offsets = [0, 0], sizes = [8, 32], strides = [1, 1]} : vector<8x128xf32> to vector<8x32xf32>
    %328 = vector.extract_strided_slice %325 {offsets = [0, 32], sizes = [8, 32], strides = [1, 1]} : vector<8x128xf32> to vector<8x32xf32>
    %329 = vector.extract_strided_slice %325 {offsets = [0, 96], sizes = [8, 32], strides = [1, 1]} : vector<8x128xf32> to vector<8x32xf32>
    %330 = vector.extract_strided_slice %326 {offsets = [0, 64], sizes = [8, 32], strides = [1, 1]} : vector<8x128xf32> to vector<8x32xf32>
    %331 = arith.mulf %328, %309 : vector<8x32xf32>
    %332 = arith.mulf %327, %330 : vector<8x32xf32>
    %333 = arith.addf %331, %332 : vector<8x32xf32>
    %334 = math.tanh %333 : vector<8x32xf32>
    %335 = arith.mulf %329, %334 : vector<8x32xf32>
    %336 = arith.index_cast %c3_i32_100 : i32 to index
    %c0_105 = arith.constant 0 : index
    %c0_106 = arith.constant 0 : index
    %337 = vector.load %arg14[%336, %c0_105, %c0_106] : memref<8x8x32xf32, #tpu.memory_space<vmem>>, vector<1x8x32xf32>
    %338 = vector.shape_cast %337 : vector<1x8x32xf32> to vector<8x32xf32>
    %339 = vector.shape_cast %335 : vector<8x32xf32> to vector<1x8x32xf32>
    tpu.vector_store %arg14[%336, %c0_105, %c0_106], %339 {strides = array<i32>} : memref<8x8x32xf32, #tpu.memory_space<vmem>>, vector<1x8x32xf32>,
    %c4_i32_107 = arith.constant 4 : i32
    %340 = arith.index_cast %c4_i32_107 : i32 to index
    %c0_108 = arith.constant 0 : index
    %c0_109 = arith.constant 0 : index
    %341 = vector.load %arg13[%340, %c0_108, %c0_109] : memref<8x8x128xf32, #tpu.memory_space<vmem>>, vector<1x8x128xf32>
    %342 = vector.shape_cast %341 : vector<1x8x128xf32> to vector<8x128xf32>
    %cst_110 = arith.constant dense<0.000000e+00> : vector<8x128xf32>
    %343 = tpu.matmul %335, %242, %cst_110 {dimension_numbers = #tpu.dot_dimension_numbers<[1], [0], [0], [1], [0, 0, 1, 1], [], []>} : vector<8x32xf32>, vector<32x128xf32>, vector<8x128xf32> -> vector<8x128xf32>
    %344 = arith.addf %342, %343 : vector<8x128xf32>
    %345 = arith.negf %344 : vector<8x128xf32>
    %346 = math.exp %345 : vector<8x128xf32>
    %cst_111 = arith.constant 1.000000e+00 : f32
    %347 = vector.broadcast %cst_111 : f32 to vector<8x128xf32>
    %348 = arith.addf %347, %346 : vector<8x128xf32>
    %349 = arith.divf %347, %348 : vector<8x128xf32>
    %350 = math.tanh %344 : vector<8x128xf32>
    %351 = vector.extract_strided_slice %349 {offsets = [0, 0], sizes = [8, 32], strides = [1, 1]} : vector<8x128xf32> to vector<8x32xf32>
    %352 = vector.extract_strided_slice %349 {offsets = [0, 32], sizes = [8, 32], strides = [1, 1]} : vector<8x128xf32> to vector<8x32xf32>
    %353 = vector.extract_strided_slice %349 {offsets = [0, 96], sizes = [8, 32], strides = [1, 1]} : vector<8x128xf32> to vector<8x32xf32>
    %354 = vector.extract_strided_slice %350 {offsets = [0, 64], sizes = [8, 32], strides = [1, 1]} : vector<8x128xf32> to vector<8x32xf32>
    %355 = arith.mulf %352, %333 : vector<8x32xf32>
    %356 = arith.mulf %351, %354 : vector<8x32xf32>
    %357 = arith.addf %355, %356 : vector<8x32xf32>
    %358 = math.tanh %357 : vector<8x32xf32>
    %359 = arith.mulf %353, %358 : vector<8x32xf32>
    %360 = arith.index_cast %c4_i32_107 : i32 to index
    %c0_112 = arith.constant 0 : index
    %c0_113 = arith.constant 0 : index
    %361 = vector.load %arg14[%360, %c0_112, %c0_113] : memref<8x8x32xf32, #tpu.memory_space<vmem>>, vector<1x8x32xf32>
    %362 = vector.shape_cast %361 : vector<1x8x32xf32> to vector<8x32xf32>
    %363 = vector.shape_cast %359 : vector<8x32xf32> to vector<1x8x32xf32>
    tpu.vector_store %arg14[%360, %c0_112, %c0_113], %363 {strides = array<i32>} : memref<8x8x32xf32, #tpu.memory_space<vmem>>, vector<1x8x32xf32>,
    %c5_i32_114 = arith.constant 5 : i32
    %364 = arith.index_cast %c5_i32_114 : i32 to index
    %c0_115 = arith.constant 0 : index
    %c0_116 = arith.constant 0 : index
    %365 = vector.load %arg13[%364, %c0_115, %c0_116] : memref<8x8x128xf32, #tpu.memory_space<vmem>>, vector<1x8x128xf32>
    %366 = vector.shape_cast %365 : vector<1x8x128xf32> to vector<8x128xf32>
    %cst_117 = arith.constant dense<0.000000e+00> : vector<8x128xf32>
    %367 = tpu.matmul %359, %242, %cst_117 {dimension_numbers = #tpu.dot_dimension_numbers<[1], [0], [0], [1], [0, 0, 1, 1], [], []>} : vector<8x32xf32>, vector<32x128xf32>, vector<8x128xf32> -> vector<8x128xf32>
    %368 = arith.addf %366, %367 : vector<8x128xf32>
    %369 = arith.negf %368 : vector<8x128xf32>
    %370 = math.exp %369 : vector<8x128xf32>
    %cst_118 = arith.constant 1.000000e+00 : f32
    %371 = vector.broadcast %cst_118 : f32 to vector<8x128xf32>
    %372 = arith.addf %371, %370 : vector<8x128xf32>
    %373 = arith.divf %371, %372 : vector<8x128xf32>
    %374 = math.tanh %368 : vector<8x128xf32>
    %375 = vector.extract_strided_slice %373 {offsets = [0, 0], sizes = [8, 32], strides = [1, 1]} : vector<8x128xf32> to vector<8x32xf32>
    %376 = vector.extract_strided_slice %373 {offsets = [0, 32], sizes = [8, 32], strides = [1, 1]} : vector<8x128xf32> to vector<8x32xf32>
    %377 = vector.extract_strided_slice %373 {offsets = [0, 96], sizes = [8, 32], strides = [1, 1]} : vector<8x128xf32> to vector<8x32xf32>
    %378 = vector.extract_strided_slice %374 {offsets = [0, 64], sizes = [8, 32], strides = [1, 1]} : vector<8x128xf32> to vector<8x32xf32>
    %379 = arith.mulf %376, %357 : vector<8x32xf32>
    %380 = arith.mulf %375, %378 : vector<8x32xf32>
    %381 = arith.addf %379, %380 : vector<8x32xf32>
    %382 = math.tanh %381 : vector<8x32xf32>
    %383 = arith.mulf %377, %382 : vector<8x32xf32>
    %384 = arith.index_cast %c5_i32_114 : i32 to index
    %c0_119 = arith.constant 0 : index
    %c0_120 = arith.constant 0 : index
    %385 = vector.load %arg14[%384, %c0_119, %c0_120] : memref<8x8x32xf32, #tpu.memory_space<vmem>>, vector<1x8x32xf32>
    %386 = vector.shape_cast %385 : vector<1x8x32xf32> to vector<8x32xf32>
    %387 = vector.shape_cast %383 : vector<8x32xf32> to vector<1x8x32xf32>
    tpu.vector_store %arg14[%384, %c0_119, %c0_120], %387 {strides = array<i32>} : memref<8x8x32xf32, #tpu.memory_space<vmem>>, vector<1x8x32xf32>,
    %c6_i32_121 = arith.constant 6 : i32
    %388 = arith.index_cast %c6_i32_121 : i32 to index
    %c0_122 = arith.constant 0 : index
    %c0_123 = arith.constant 0 : index
    %389 = vector.load %arg13[%388, %c0_122, %c0_123] : memref<8x8x128xf32, #tpu.memory_space<vmem>>, vector<1x8x128xf32>
    %390 = vector.shape_cast %389 : vector<1x8x128xf32> to vector<8x128xf32>
    %cst_124 = arith.constant dense<0.000000e+00> : vector<8x128xf32>
    %391 = tpu.matmul %383, %242, %cst_124 {dimension_numbers = #tpu.dot_dimension_numbers<[1], [0], [0], [1], [0, 0, 1, 1], [], []>} : vector<8x32xf32>, vector<32x128xf32>, vector<8x128xf32> -> vector<8x128xf32>
    %392 = arith.addf %390, %391 : vector<8x128xf32>
    %393 = arith.negf %392 : vector<8x128xf32>
    %394 = math.exp %393 : vector<8x128xf32>
    %cst_125 = arith.constant 1.000000e+00 : f32
    %395 = vector.broadcast %cst_125 : f32 to vector<8x128xf32>
    %396 = arith.addf %395, %394 : vector<8x128xf32>
    %397 = arith.divf %395, %396 : vector<8x128xf32>
    %398 = math.tanh %392 : vector<8x128xf32>
    %399 = vector.extract_strided_slice %397 {offsets = [0, 0], sizes = [8, 32], strides = [1, 1]} : vector<8x128xf32> to vector<8x32xf32>
    %400 = vector.extract_strided_slice %397 {offsets = [0, 32], sizes = [8, 32], strides = [1, 1]} : vector<8x128xf32> to vector<8x32xf32>
    %401 = vector.extract_strided_slice %397 {offsets = [0, 96], sizes = [8, 32], strides = [1, 1]} : vector<8x128xf32> to vector<8x32xf32>
    %402 = vector.extract_strided_slice %398 {offsets = [0, 64], sizes = [8, 32], strides = [1, 1]} : vector<8x128xf32> to vector<8x32xf32>
    %403 = arith.mulf %400, %381 : vector<8x32xf32>
    %404 = arith.mulf %399, %402 : vector<8x32xf32>
    %405 = arith.addf %403, %404 : vector<8x32xf32>
    %406 = math.tanh %405 : vector<8x32xf32>
    %407 = arith.mulf %401, %406 : vector<8x32xf32>
    %408 = arith.index_cast %c6_i32_121 : i32 to index
    %c0_126 = arith.constant 0 : index
    %c0_127 = arith.constant 0 : index
    %409 = vector.load %arg14[%408, %c0_126, %c0_127] : memref<8x8x32xf32, #tpu.memory_space<vmem>>, vector<1x8x32xf32>
    %410 = vector.shape_cast %409 : vector<1x8x32xf32> to vector<8x32xf32>
    %411 = vector.shape_cast %407 : vector<8x32xf32> to vector<1x8x32xf32>
    tpu.vector_store %arg14[%408, %c0_126, %c0_127], %411 {strides = array<i32>} : memref<8x8x32xf32, #tpu.memory_space<vmem>>, vector<1x8x32xf32>,
    %c7_i32_128 = arith.constant 7 : i32
    %412 = arith.index_cast %c7_i32_128 : i32 to index
    %c0_129 = arith.constant 0 : index
    %c0_130 = arith.constant 0 : index
    %413 = vector.load %arg13[%412, %c0_129, %c0_130] : memref<8x8x128xf32, #tpu.memory_space<vmem>>, vector<1x8x128xf32>
    %414 = vector.shape_cast %413 : vector<1x8x128xf32> to vector<8x128xf32>
    %cst_131 = arith.constant dense<0.000000e+00> : vector<8x128xf32>
    %415 = tpu.matmul %407, %242, %cst_131 {dimension_numbers = #tpu.dot_dimension_numbers<[1], [0], [0], [1], [0, 0, 1, 1], [], []>} : vector<8x32xf32>, vector<32x128xf32>, vector<8x128xf32> -> vector<8x128xf32>
    %416 = arith.addf %414, %415 : vector<8x128xf32>
    %417 = arith.negf %416 : vector<8x128xf32>
    %418 = math.exp %417 : vector<8x128xf32>
    %cst_132 = arith.constant 1.000000e+00 : f32
    %419 = vector.broadcast %cst_132 : f32 to vector<8x128xf32>
    %420 = arith.addf %419, %418 : vector<8x128xf32>
    %421 = arith.divf %419, %420 : vector<8x128xf32>
    %422 = math.tanh %416 : vector<8x128xf32>
    %423 = vector.extract_strided_slice %421 {offsets = [0, 0], sizes = [8, 32], strides = [1, 1]} : vector<8x128xf32> to vector<8x32xf32>
    %424 = vector.extract_strided_slice %421 {offsets = [0, 32], sizes = [8, 32], strides = [1, 1]} : vector<8x128xf32> to vector<8x32xf32>
    %425 = vector.extract_strided_slice %421 {offsets = [0, 96], sizes = [8, 32], strides = [1, 1]} : vector<8x128xf32> to vector<8x32xf32>
    %426 = vector.extract_strided_slice %422 {offsets = [0, 64], sizes = [8, 32], strides = [1, 1]} : vector<8x128xf32> to vector<8x32xf32>
    %427 = arith.mulf %424, %405 : vector<8x32xf32>
    %428 = arith.mulf %423, %426 : vector<8x32xf32>
    %429 = arith.addf %427, %428 : vector<8x32xf32>
    %430 = math.tanh %429 : vector<8x32xf32>
    %431 = arith.mulf %425, %430 : vector<8x32xf32>
    %432 = arith.index_cast %c7_i32_128 : i32 to index
    %c0_133 = arith.constant 0 : index
    %c0_134 = arith.constant 0 : index
    %433 = vector.load %arg14[%432, %c0_133, %c0_134] : memref<8x8x32xf32, #tpu.memory_space<vmem>>, vector<1x8x32xf32>
    %434 = vector.shape_cast %433 : vector<1x8x32xf32> to vector<8x32xf32>
    %435 = vector.shape_cast %431 : vector<8x32xf32> to vector<1x8x32xf32>
    tpu.vector_store %arg14[%432, %c0_133, %c0_134], %435 {strides = array<i32>} : memref<8x8x32xf32, #tpu.memory_space<vmem>>, vector<1x8x32xf32>,
    %c8_i32_135 = arith.constant 8 : i32
    %c0_136 = arith.constant 0 : index
    %c0_137 = arith.constant 0 : index
    %c0_138 = arith.constant 0 : index
    %436 = vector.load %arg14[%c0_136, %c0_137, %c0_138] : memref<8x8x32xf32, #tpu.memory_space<vmem>>, vector<8x8x32xf32>
    %437 = vector.shape_cast %436 : vector<8x8x32xf32> to vector<64x32xf32>
    %c0_139 = arith.constant 0 : index
    %c0_140 = arith.constant 0 : index
    %c0_141 = arith.constant 0 : index
    %438 = vector.load %arg2[%c0_139, %c0_140, %c0_141] : memref<8x8x1xf32, #tpu.memory_space<vmem>>, vector<8x8x1xf32>
    %439 = vector.shape_cast %438 : vector<8x8x1xf32> to vector<64x1xf32>
    %440 = vector.broadcast %439 : vector<64x1xf32> to vector<64x32xf32>
    %441 = arith.mulf %437, %440 : vector<64x32xf32>
    %c0_142 = arith.constant 0 : index
    %c0_143 = arith.constant 0 : index
    %442 = vector.load %arg10[%c0_142, %c0_143] : memref<32x128xf32, #tpu.memory_space<vmem>>, vector<32x128xf32>
    %cst_144 = arith.constant dense<0.000000e+00> : vector<64x128xf32>
    %443 = tpu.matmul %441, %442, %cst_144 {dimension_numbers = #tpu.dot_dimension_numbers<[1], [0], [0], [1], [0, 0, 1, 1], [], []>} : vector<64x32xf32>, vector<32x128xf32>, vector<64x128xf32> -> vector<64x128xf32>
    %c0_145 = arith.constant 0 : index
    %c0_146 = arith.constant 0 : index
    %444 = vector.load %arg11[%c0_145, %c0_146] : memref<1x128xf32, #tpu.memory_space<vmem>>, vector<1x128xf32>
    %445 = vector.broadcast %444 : vector<1x128xf32> to vector<64x128xf32>
    %446 = arith.addf %443, %445 : vector<64x128xf32>
    %447 = vector.extract_strided_slice %446 {offsets = [0, 0], sizes = [64, 1], strides = [1, 1]} : vector<64x128xf32> to vector<64x1xf32>
    %448 = vector.shape_cast %447 : vector<64x1xf32> to vector<8x8x1xf32>
    %c0_147 = arith.constant 0 : index
    %c0_148 = arith.constant 0 : index
    %c0_149 = arith.constant 0 : index
    %449 = vector.load %arg12[%c0_147, %c0_148, %c0_149] : memref<8x8x1xf32, #tpu.memory_space<vmem>>, vector<8x8x1xf32>
    tpu.vector_store %arg12[%c0_147, %c0_148, %c0_149], %448 {strides = array<i32>} : memref<8x8x1xf32, #tpu.memory_space<vmem>>, vector<8x8x1xf32>,
    return
  }
  func.func @transform_0(%arg0: i32) -> (i32, i32, i32) {
    %c0_i32 = arith.constant 0 : i32
    %c0_i32_0 = arith.constant 0 : i32
    %c0_i32_1 = arith.constant 0 : i32
    return %c0_i32, %arg0, %c0_i32_0 : i32, i32, i32
  }
  func.func @transform_1(%arg0: i32) -> (i32, i32, i32) {
    %c0_i32 = arith.constant 0 : i32
    %c0_i32_0 = arith.constant 0 : i32
    %c0_i32_1 = arith.constant 0 : i32
    return %c0_i32, %arg0, %c0_i32_0 : i32, i32, i32
  }
  func.func @transform_2(%arg0: i32) -> (i32, i32) {
    %c0_i32 = arith.constant 0 : i32
    %c0_i32_0 = arith.constant 0 : i32
    %c0_i32_1 = arith.constant 0 : i32
    return %c0_i32, %c0_i32_0 : i32, i32
  }
  func.func @transform_3(%arg0: i32) -> (i32, i32) {
    %c0_i32 = arith.constant 0 : i32
    %c0_i32_0 = arith.constant 0 : i32
    %c0_i32_1 = arith.constant 0 : i32
    return %c0_i32, %c0_i32_0 : i32, i32
  }
  func.func @transform_4(%arg0: i32) -> (i32, i32) {
    %c0_i32 = arith.constant 0 : i32
    %c0_i32_0 = arith.constant 0 : i32
    %c0_i32_1 = arith.constant 0 : i32
    return %c0_i32, %c0_i32_0 : i32, i32
  }
  func.func @transform_5(%arg0: i32) -> (i32, i32) {
    %c0_i32 = arith.constant 0 : i32
    %c0_i32_0 = arith.constant 0 : i32
    %c0_i32_1 = arith.constant 0 : i32
    return %c0_i32, %c0_i32_0 : i32, i32
  }
  func.func @transform_6(%arg0: i32) -> (i32, i32) {
    %c0_i32 = arith.constant 0 : i32
    %c0_i32_0 = arith.constant 0 : i32
    %c0_i32_1 = arith.constant 0 : i32
    return %c0_i32, %c0_i32_0 : i32, i32
  }
  func.func @transform_7(%arg0: i32) -> (i32, i32) {
    %c0_i32 = arith.constant 0 : i32
    %c0_i32_0 = arith.constant 0 : i32
    %c0_i32_1 = arith.constant 0 : i32
    return %c0_i32, %c0_i32_0 : i32, i32
  }
  func.func @transform_8(%arg0: i32) -> (i32, i32) {
    %c0_i32 = arith.constant 0 : i32
    %c0_i32_0 = arith.constant 0 : i32
    %c0_i32_1 = arith.constant 0 : i32
    return %c0_i32, %c0_i32_0 : i32, i32
  }
  func.func @transform_9(%arg0: i32) -> (i32, i32) {
    %c0_i32 = arith.constant 0 : i32
    %c0_i32_0 = arith.constant 0 : i32
    %c0_i32_1 = arith.constant 0 : i32
    return %c0_i32, %c0_i32_0 : i32, i32
  }
  func.func @transform_10(%arg0: i32) -> (i32, i32) {
    %c0_i32 = arith.constant 0 : i32
    %c0_i32_0 = arith.constant 0 : i32
    %c0_i32_1 = arith.constant 0 : i32
    return %c0_i32, %c0_i32_0 : i32, i32
  }
  func.func @transform_11(%arg0: i32) -> (i32, i32, i32) {
    %c0_i32 = arith.constant 0 : i32
    %c0_i32_0 = arith.constant 0 : i32
    %c0_i32_1 = arith.constant 0 : i32
    return %c0_i32, %arg0, %c0_i32_0 : i32, i32, i32
  }
}

</mosaic_0001>

<bundles_post_ra>
// kernel: tpu_custom_call.1
= control target key start
LH: loop header
LB: loop body
LE: loop exit
PB: predicated region body
PF: predicated region fallthrough
CT: control target
= control target key end

     0   :  { %v3270_v0 = vmov 0   ;;  %v3271_v3 = vmov 1   ;;  %v3272_v6 = vmov 2   ;;  %v3273_v7 = vmov 3   ;;  %s3277_s22 = smov 32   ;;  %s4000_s0 = inlined_call_operand.vmem [shape: s32[8,8,4], index: 0, kind: input, shape index: {}]   ;;  %s4001_s2 = inlined_call_operand.vmem [shape: f32[128,32], index: 2, kind: input, shape index: {}]   ;;  %s4002_s3 = inlined_call_operand.vmem [shape: f32[32,128], index: 3, kind: input, shape index: {}]   ;;  %s4003_s4 = inlined_call_operand.vmem [shape: f32[32,128], index: 4, kind: input, shape index: {}]   ;;  %s4004_s5 = inlined_call_operand.vmem [shape: f32[1,128], index: 5, kind: input, shape index: {}]   ;;  %s4005_s6 = inlined_call_operand.vmem [shape: f32[32,128], index: 6, kind: input, shape index: {}]   ;;  %s4006_s7 = inlined_call_operand.vmem [shape: f32[32,128], index: 7, kind: input, shape index: {}]   ;;  %s4007_s8 = inlined_call_operand.vmem [shape: f32[1,128], index: 8, kind: input, shape index: {}]   ;;  %s4008_s1 = inlined_call_operand.vmem [shape: f32[8,8,1], index: 1, kind: input, shape index: {}]   ;;  %s4009_s9 = inlined_call_operand.vmem [shape: f32[32,128], index: 9, kind: input, shape index: {}]   ;;  %s4010_s10 = inlined_call_operand.vmem [shape: f32[1,128], index: 10, kind: input, shape index: {}]   ;;  %s4011_s11 = inlined_call_operand.vmem [shape: f32[8,8,1], index: 11, kind: output, shape index: {}]  }
   0x1   :  { %3119 = vset.pattern.permute.xlu1 %v3270_v0  ;;  %3117 = vset.pattern.permute.xlu0 %v3270_v0  ;;  %v3343_v1 = vld [vmem:[%s4000_s0 + $0x8] sm:$0xff]  ;;  %v38_v2 = vld [vmem:[%s4000_s0] sm:$0xff]  ;;  %v295_v4 = vld [vmem:[%s4001_s2 + $0x78] sm:$0xff]  ;;  %v46_v30 = vlaneseq  ;;  %v3274_v36 = vmov 0.0  }
   0x2   :  { %52 = vperm.xlu1 %3119, %v3343_v1   ;;  %49 = vperm.xlu0 %3117, %v38_v2   ;;  %v294_v5 = vld [vmem:[%s4001_s2 + $0x70] sm:$0xff]  ;;  %v293_v8 = vld [vmem:[%s4001_s2 + $0x68] sm:$0xff]  ;;  %v292_v10 = vld [vmem:[%s4001_s2 + $0x60] sm:$0xff] }
   0x3   :  { %2821 = vmatprep.subr.mxu0 %v295_v4  ;;  %v40_v9 = vld [vmem:[%s4000_s0 + $0x10] sm:$0xff]  ;;  %v291_v11 = vld [vmem:[%s4001_s2 + $0x58] sm:$0xff]  ;;  %v289_v14 = vld [vmem:[%s4001_s2 + $0x48] sm:$0xff]  ;;  %v3456_v33 = vand.u32 127, %v46_v30 }
   0x4   :  { %2822 = vmatpush3.msra.mxu0 %v295_v4  ;;  %v290_v12 = vld [vmem:[%s4001_s2 + $0x50] sm:$0xff]  ;;  %v41_v13 = vld [vmem:[%s4000_s0 + $0x18] sm:$0xff]  ;;  %v288_v15 = vld [vmem:[%s4001_s2 + $0x40] sm:$0xff] }
   0x5   :  { %2823 = vmatprep.subr.mxu0 %v294_v5  ;;  %v42_v16 = vld [vmem:[%s4000_s0 + $0x20] sm:$0xff]  ;;  %v287_v17 = vld [vmem:[%s4001_s2 + $0x38] sm:$0xff]  ;;  %v286_v18 = vld [vmem:[%s4001_s2 + $0x30] sm:$0xff] }
   0x6   :  { %3120 = vset.pattern.permute.xlu1 %v3271_v3  ;;  %3118 = vset.pattern.permute.xlu0 %v3271_v3  ;;  %v43_v19 = vld [vmem:[%s4000_s0 + $0x28] sm:$0xff]  ;;  %v284_v21 = vld [vmem:[%s4001_s2 + $0x20] sm:$0xff]  ;;  %v283_v22 = vld [vmem:[%s4001_s2 + $0x18] sm:$0xff] }
   0x7   :  { %108 = vperm.xlu1 %3120, %v3343_v1   ;;  %105 = vperm.xlu0 %3118, %v38_v2   ;;  %v285_v20 = vld [vmem:[%s4001_s2 + $0x28] sm:$0xff]  ;;  %v282_v23 = vld [vmem:[%s4001_s2 + $0x10] sm:$0xff]  ;;  %v280_v25 = vld [vmem:[%s4001_s2] sm:$0xff] }
   0x8   :  { %2824 = vmatpush3.msra.mxu0 %v294_v5  ;;  %v281_v24 = vld [vmem:[%s4001_s2 + $0x8] sm:$0xff]  ;;  %v45_v26 = vld [vmem:[%s4000_s0 + $0x38] sm:$0xff]  ;;  %v44_v27 = vld [vmem:[%s4000_s0 + $0x30] sm:$0xff] }
   0x9   :  { %2825 = vmatprep.subr.mxu0 %v293_v8  ;;  %v3443_v28 = vld [vmem:[%s4002_s3 + $0x18] sm:$0xff]  ;;  %v3450_v29 = vld [vmem:[%s4002_s3 + $0x10] sm:$0xff] }
   0xa   :  { %2826 = vmatpush3.msra.mxu0 %v293_v8  ;;  %3101 = vmatprep.subr.mxu1 %v3443_v28 }
   0xb   :  { %3121 = vset.pattern.permute.xlu1 %v3272_v6  ;;  %3124 = vset.pattern.permute.xlu0 %v3273_v7 }
   0xc   :  { %161 = vperm.xlu1 %3121, %v38_v2   ;;  %217 = vperm.xlu0 %3124, %v38_v2  }
   0xd   :  { %2827 = vmatprep.subr.mxu0 %v292_v10  ;;  %3105 = vmatpush3.msra.mxu1 %v3443_v28 }
   0xe   :  { %2828 = vmatpush3.msra.mxu0 %v292_v10  ;;  %3102 = vmatprep.subr.mxu1 %v3450_v29 }
   0xf   :  { %2829 = vmatprep.subr.mxu0 %v291_v11  ;;  %3106 = vmatpush3.msra.mxu1 %v3450_v29 }
  0x10   :  { %3122 = vset.pattern.permute.xlu1 %v3270_v0  ;;  %220 = vperm.xlu0 %3124, %v3343_v1  }
  0x11   :  { %55 = vperm.xlu1 %3122, %v40_v9   ;;  %2830 = vmatpush3.msra.mxu0 %v291_v11 }
  0x12   :  { %2831 = vmatprep.subr.mxu0 %v290_v12 }
  0x13   :  { %2832 = vmatpush3.msra.mxu0 %v290_v12 }
  0x14   :  { %223 = vperm.xlu0 %3124, %v40_v9   ;;  %2833 = vmatprep.subr.mxu0 %v289_v14 }
  0x15   :  { %3123 = vset.pattern.permute.xlu1 %v3271_v3  ;;  %2834 = vmatpush3.msra.mxu0 %v289_v14 }
  0x16   :  { %111 = vperm.xlu1 %3123, %v40_v9   ;;  %2835 = vmatprep.subr.mxu0 %v288_v15 }
  0x17   :  { %2836 = vmatpush3.msra.mxu0 %v288_v15 }
  0x18   :  { %226 = vperm.xlu0 %3124, %v41_v13   ;;  %2837 = vmatprep.subr.mxu0 %v287_v17 }
  0x19   :  { %2838 = vmatpush3.msra.mxu0 %v287_v17 }
  0x1a   :  { %3125 = vset.pattern.permute.xlu1 %v3270_v0  ;;  %2839 = vmatprep.subr.mxu0 %v286_v18 }
  0x1b   :  { %58 = vperm.xlu1 %3125, %v41_v13   ;;  %2840 = vmatpush3.msra.mxu0 %v286_v18 }
  0x1c   :  { %229 = vperm.xlu0 %3124, %v42_v16   ;;  %2841 = vmatprep.subr.mxu0 %v285_v20 }
  0x1d   :  { %2842 = vmatpush3.msra.mxu0 %v285_v20 }
  0x1e   :  { %2843 = vmatprep.subr.mxu0 %v284_v21 }
  0x1f   :  { %3126 = vset.pattern.permute.xlu1 %v3271_v3  ;;  %2844 = vmatpush3.msra.mxu0 %v284_v21 }
  0x20   :  { %114 = vperm.xlu1 %3126, %v41_v13   ;;  %232 = vperm.xlu0 %3124, %v43_v19  }
  0x21   :  { %2845 = vmatprep.subr.mxu0 %v283_v22 }
  0x22   :  { %2846 = vmatpush3.msra.mxu0 %v283_v22 }
  0x23   :  { %2847 = vmatprep.subr.mxu0 %v282_v23 }
  0x24   :  { %3127 = vset.pattern.permute.xlu1 %v3272_v6  ;;  %3137 = vset.pattern.permute.xlu0 %v3272_v6 }
  0x25   :  { %167 = vperm.xlu1 %3127, %v40_v9   ;;  %164 = vperm.xlu0 %3137, %v3343_v1  }
  0x26   :  { %2848 = vmatpush3.msra.mxu0 %v282_v23 }
  0x27   :  { %2849 = vmatprep.subr.mxu0 %v281_v24 }
  0x28   :  { %2850 = vmatpush3.msra.mxu0 %v281_v24 }
  0x29   :  { %3128 = vset.pattern.permute.xlu1 %v3270_v0  ;;  %170 = vperm.xlu0 %3137, %v41_v13  }
  0x2a   :  { %61 = vperm.xlu1 %3128, %v42_v16   ;;  %2851 = vmatprep.subr.mxu0 %v280_v25 }
  0x2b   :  { %2852 = vmatpush3.msra.mxu0 %v280_v25 }
  0x2c   :  { %2865 = vmatprep.subr.mxu0 %v3443_v28 }
  0x2d   :  { %176 = vperm.xlu0 %3137, %v43_v19  }
  0x2e   :  { %3129 = vset.pattern.permute.xlu1 %v3271_v3 }
  0x2f   :  { %117 = vperm.xlu1 %3129, %v42_v16  }
  0x31   :  { %182 = vperm.xlu0 %3137, %v45_v26  }
  0x33   :  { %3130 = vset.pattern.permute.xlu1 %v3270_v0 }
  0x34   :  { %64 = vperm.xlu1 %3130, %v43_v19  }
  0x35   :  { %3141 = vset.pattern.permute.xlu0 %v3270_v0 }
  0x38   :  { %3131 = vset.pattern.permute.xlu1 %v3271_v3 }
  0x39   :  { %120 = vperm.xlu1 %3131, %v43_v19  }
  0x3d   :  { %3132 = vset.pattern.permute.xlu1 %v3272_v6 }
  0x3e   :  { %173 = vperm.xlu1 %3132, %v42_v16  }
  0x42   :  { %3133 = vset.pattern.permute.xlu1 %v3270_v0 }
  0x43   :  { %67 = vperm.xlu1 %3133, %v44_v27  }
  0x47   :  { %3134 = vset.pattern.permute.xlu1 %v3271_v3 }
  0x48   :  { %123 = vperm.xlu1 %3134, %v44_v27  }
  0x4c   :  { %3135 = vset.pattern.permute.xlu1 %v3270_v0 }
  0x4d   :  { %70 = vperm.xlu1 %3135, %v45_v26  }
  0x51   :  { %3136 = vset.pattern.permute.xlu1 %v3271_v3 }
  0x52   :  { %126 = vperm.xlu1 %3136, %v45_v26  }
  0x56   :  { %3138 = vset.pattern.permute.xlu1 %v3272_v6 }
  0x57   :  { %179 = vperm.xlu1 %3138, %v44_v27  }
  0x5b   :  { %3139 = vset.pattern.permute.xlu1 %v3273_v7 }
  0x5c   :  { %235 = vperm.xlu1 %3139, %v44_v27  }
  0x60   :  { %238 = vperm.xlu1 %3139, %v45_v26  }
  0x64   :  { %3140 = vset.pattern.permute.xlu1 %v3270_v0 }
  0x7d   :  { %v53_v31 = vpop.permute.xlu1 %52  ;;  %v50_v32 = vpop.permute.xlu0 %49 }
  0x7e   :  { %vm72_vm0 = vcmp.eq.s32.totalorder %v50_v32, %v3456_v33  ;;  %vm73_vm6 = vcmp.eq.s32.totalorder %v53_v31, %v3456_v33 }
  0x7f   :  { %v2592_v37 = vsel %vm72_vm0, 1.0, %v3274_v36  ;;  %v2593_v58 = vsel %vm73_vm6, 1.0, %v3274_v36 }
  0x82   :  { %v109_v34 = vpop.permute.xlu1 %108  ;;  %v106_v35 = vpop.permute.xlu0 %105 }
  0x83   :  { %vm128_vm1 = vcmp.eq.s32.totalorder %v106_v35, %v3456_v33  ;;  %vm129_vm4 = vcmp.eq.s32.totalorder %v109_v34, %v3456_v33 }
  0x84   :  { %v2600_v38 = vsel %vm128_vm1, 1.0, %v3274_v36  ;;  %v2601_v56 = vsel %vm129_vm4, 1.0, %v3274_v36 }
  0x85   :  { %v152_v39 = vadd.f32 %v2600_v38, %v2592_v37  ;;  %v153_v59 = vadd.f32 %v2601_v56, %v2593_v58 }
  0x87   :  { %v162_v40 = vpop.permute.xlu1 %161  ;;  %v218_v41 = vpop.permute.xlu0 %217 }
  0x88   :  { %vm184_vm2 = vcmp.eq.s32.totalorder %v162_v40, %v3456_v33  ;;  %vm240_vm3 = vcmp.eq.s32.totalorder %v218_v41, %v3456_v33 }
  0x89   :  { %v2608_v42 = vsel %vm184_vm2, 1.0, %v3274_v36  ;;  %v2616_v43 = vsel %vm240_vm3, 1.0, %v3274_v36 }
  0x8a   :  { %v208_v44 = vadd.f32 %v2608_v42, %v152_v39 }
  0x8b   :  { %v221_v45 = vpop.permute.xlu0 %220 }
  0x8c   :  { %v56_v46 = vpop.permute.xlu1 %55  ;;  %v264_v47 = vadd.f32 %v2616_v43, %v208_v44  ;;  %vm241_vm8 = vcmp.eq.s32.totalorder %v221_v45, %v3456_v33 }
  0x8d   :  { %vm74_vm7 = vcmp.eq.s32.totalorder %v56_v46, %v3456_v33  ;;  %v2617_v61 = vsel %vm241_vm8, 1.0, %v3274_v36 }
  0x8e   :  { %v272_v48 = vmul.f32 0.25, %v264_v47  ;;  %v2594_v60 = vsel %vm74_vm7, 1.0, %v3274_v36 }
  0x8f   :  { %v224_v49 = vpop.permute.xlu0 %223 }
  0x90   :  { %2853 = vmatprep.mubr.f32.mxu0 %v272_v48  ;;  %vm242_vm9 = vcmp.eq.s32.totalorder %v224_v49, %v3456_v33 }
  0x91   :  { %v112_v50 = vpop.permute.xlu1 %111  ;;  %v2618_v1 = vsel %vm242_vm9, 1.0, %v3274_v36 }
  0x92   :  { %vm130_vm5 = vcmp.eq.s32.totalorder %v112_v50, %v3456_v33 }
  0x93   :  { %v227_v51 = vpop.permute.xlu0 %226  ;;  %v2602_v57 = vsel %vm130_vm5, 1.0, %v3274_v36 }
  0x94   :  { %v154_v0 = vadd.f32 %v2602_v57, %v2594_v60  ;;  %vm243_vm14 = vcmp.eq.s32.totalorder %v227_v51, %v3456_v33 }
  0x95   :  { %v2619_v13 = vsel %vm243_vm14, 1.0, %v3274_v36 }
  0x96   :  { %v59_v52 = vpop.permute.xlu1 %58 }
  0x97   :  { %v3466_v53 = vpop.permute.xlu0 %229  ;;  %vm75_vm11 = vcmp.eq.s32.totalorder %v59_v52, %v3456_v33 }
  0x98   :  { %v2595_v7 = vsel %vm75_vm11, 1.0, %v3274_v36  ;;  %vm244_vm6 = vcmp.eq.s32.totalorder %v3466_v53, %v3456_v33 }
  0x99   :  { %v2620_v38 = vsel %vm244_vm6, 1.0, %v3274_v36 }
  0x9b   :  { %v115_v54 = vpop.permute.xlu1 %114  ;;  %v3470_v55 = vpop.permute.xlu0 %232 }
  0x9c   :  { %vm131_vm10 = vcmp.eq.s32.totalorder %v115_v54, %v3456_v33  ;;  %vm245_vm5 = vcmp.eq.s32.totalorder %v3470_v55, %v3456_v33 }
  0x9d   :  { %v2603_v2 = vsel %vm131_vm10, 1.0, %v3274_v36  ;;  %v2621_v35 = vsel %vm245_vm5, 1.0, %v3274_v36 }
  0x9e   :  { %v155_v9 = vadd.f32 %v2603_v2, %v2595_v7  ;;  %v3544_v7 = vld [vmem:[%s4003_s4 + $0x18] sm:$0xff] }
  0xa0   :  { %v168_v62 = vpop.permute.xlu1 %167  ;;  %v165_v63 = vpop.permute.xlu0 %164 }
  0xa1   :  { %vm186_vm12 = vcmp.eq.s32.totalorder %v168_v62, %v3456_v33  ;;  %vm185_vm13 = vcmp.eq.s32.totalorder %v165_v63, %v3456_v33 }
  0xa2   :  { %v2610_v3 = vsel %vm186_vm12, 1.0, %v3274_v36  ;;  %v2609_v4 = vsel %vm185_vm13, 1.0, %v3274_v36 }
  0xa3   :  { %v210_v5 = vadd.f32 %v2610_v3, %v154_v0  ;;  %v209_v6 = vadd.f32 %v2609_v4, %v153_v59  ;;  %v402_v3 = vld [vmem:[%s4002_s3 + $0x8] sm:$0xff]  ;;  %v401_v4 = vld [vmem:[%s4002_s3] sm:$0xff] }
  0xa4   :  { %v171_v8 = vpop.permute.xlu0 %170  ;;  %3103 = vmatprep.subr.mxu1 %v402_v3 }
  0xa5   :  { %vm187_vm15 = vcmp.eq.s32.totalorder %v171_v8, %v3456_v33  ;;  %v62_v10 = vpop.permute.xlu1 %61  ;;  %v265_v11 = vadd.f32 %v2617_v61, %v209_v6  ;;  %v266_v12 = vadd.f32 %v2618_v1, %v210_v5  ;;  %3107 = vmatpush3.msra.mxu1 %v402_v3 }
  0xa6   :  { %v2611_v14 = vsel %vm187_vm15, 1.0, %v3274_v36  ;;  %vm76_vm4 = vcmp.eq.s32.totalorder %v62_v10, %v3456_v33  ;;  %3104 = vmatprep.subr.mxu1 %v401_v4  ;;  %v3559_v10 = vld [vmem:[%s4003_s4 + $0x8] sm:$0xff] }
  0xa7   :  { %v211_v15 = vadd.f32 %v2611_v14, %v155_v9  ;;  %v273_v16 = vmul.f32 0.25, %v265_v11  ;;  %v274_v17 = vmul.f32 0.25, %v266_v12  ;;  %3108 = vmatpush3.msra.mxu1 %v401_v4  ;;  %v3550_v9 = vld [vmem:[%s4003_s4 + $0x10] sm:$0xff]  ;;  %v3568_v11 = vld [vmem:[%s4003_s4] sm:$0xff] }
  0xa8   :  { %v177_v22 = vpop.permute.xlu0 %176  ;;  %2885 = vmatprep.subr.mxu1 %v3274_v36 }
  0xa9   :  { %2854 = vmatmul.mubr.f32.vlgmr.msra.gmra.mxu0 %v273_v16  ;;  %v267_v18 = vadd.f32 %v2619_v13, %v211_v15  ;;  %vm189_vm1 = vcmp.eq.s32.totalorder %v177_v22, %v3456_v33  ;;  %v3601_v16 = vld [vmem:[%s4004_s5] ss:$0 sm:$0xff]  ;;  %s3276_s5 = smov 64  }
  0xaa   :  { %v118_v19 = vpop.permute.xlu1 %117  ;;  %2856 = vmatprep.mubr.f32.mxu0 %v274_v17  ;;  %2866 = vmatpush3.msra.mxu0 %v3443_v28  ;;  %v2613_v26 = vsel %vm189_vm1, 1.0, %v3274_v36  ;;  %vm3275_vm1 = vmmov 0  }
  0xab   :  { %v275_v20 = vmul.f32 0.25, %v267_v18  ;;  %2867 = vmatprep.subr.mxu0 %v3450_v29  ;;  %vm132_vm2 = vcmp.eq.s32.totalorder %v118_v19, %v3456_v33 }
  0xac   :  { %2868 = vmatpush3.msra.mxu0 %v3450_v29  ;;  %v2604_v27 = vsel %vm132_vm2, 1.0, %v3274_v36  ;;  %v2596_v29 = vsel %vm76_vm4, 1.0, %v3274_v36  ;;  %v183_v51 = vpop.permute.xlu0 %182  ;;  %vm2579_vm2 = vcmask 7168  }
  0xad   :  { %2857 = vmatmul.mubr.f32.gmra.mxu0 %v275_v20  ;;  %v156_v32 = vadd.f32 %v2604_v27, %v2596_v29  ;;  %vm191_vm13 = vcmp.eq.s32.totalorder %v183_v51, %v3456_v33  ;;  %2869 = vmatprep.subr.mxu0 %v402_v3 }
  0xae   :  { %v2615_v60 = vsel %vm191_vm13, 1.0, %v3274_v36  ;;  %2870 = vmatpush3.msra.mxu0 %v402_v3 }
  0xaf   :  { %v65_v21 = vpop.permute.xlu1 %64  ;;  %2871 = vmatprep.subr.mxu0 %v401_v4 }
  0xb0   :  { %vm77_vm0 = vcmp.eq.s32.totalorder %v65_v21, %v3456_v33  ;;  %2872 = vmatpush3.msra.mxu0 %v401_v4 }
  0xb1   :  { %v2597_v24 = vsel %vm77_vm0, 1.0, %v3274_v36  ;;  %2918 = vmatprep.subr.mxu0 %v3274_v36  ;;  %vm412_vm0 = vcmask 261120  }
  0xb4   :  { %v121_v23 = vpop.permute.xlu1 %120 }
  0xb5   :  { %vm133_vm3 = vcmp.eq.s32.totalorder %v121_v23, %v3456_v33 }
  0xb6   :  { %v2605_v25 = vsel %vm133_vm3, 1.0, %v3274_v36 }
  0xb7   :  { %v157_v28 = vadd.f32 %v2605_v25, %v2597_v24 }
  0xb9   :  { %v213_v30 = vadd.f32 %v2613_v26, %v157_v28  ;;  %v174_v31 = vpop.permute.xlu1 %173 }
  0xba   :  { %vm188_vm7 = vcmp.eq.s32.totalorder %v174_v31, %v3456_v33 }
  0xbb   :  { %v2612_v34 = vsel %vm188_vm7, 1.0, %v3274_v36  ;;  %v269_v39 = vadd.f32 %v2621_v35, %v213_v30 }
  0xbc   :  { %v212_v37 = vadd.f32 %v2612_v34, %v156_v32 }
  0xbd   :  { %v277_v43 = vmul.f32 0.25, %v269_v39 }
  0xbe   :  { %v68_v40 = vpop.permute.xlu1 %67  ;;  %v268_v41 = vadd.f32 %v2620_v38, %v212_v37 }
  0xbf   :  { %vm78_vm9 = vcmp.eq.s32.totalorder %v68_v40, %v3456_v33 }
  0xc0   :  { %v276_v42 = vmul.f32 0.25, %v268_v41  ;;  %v2598_v49 = vsel %vm78_vm9, 1.0, %v3274_v36 }
  0xc2   :  { %2859 = vmatprep.mubr.f32.mxu0 %v276_v42 }
  0xc3   :  { %v124_v44 = vpop.permute.xlu1 %123  ;;  %2860 = vmatmul.mubr.f32.gmra.mxu0 %v277_v43 }
  0xc4   :  { %vm134_vm8 = vcmp.eq.s32.totalorder %v124_v44, %v3456_v33 }
  0xc5   :  { %v2606_v48 = vsel %vm134_vm8, 1.0, %v3274_v36 }
  0xc6   :  { %v158_v53 = vadd.f32 %v2606_v48, %v2598_v49 }
  0xc8   :  { %v71_v45 = vpop.permute.xlu1 %70 }
  0xc9   :  { %vm79_vm12 = vcmp.eq.s32.totalorder %v71_v45, %v3456_v33 }
  0xca   :  { %v2599_v54 = vsel %vm79_vm12, 1.0, %v3274_v36 }
  0xcd   :  { %v127_v46 = vpop.permute.xlu1 %126 }
  0xce   :  { %vm135_vm10 = vcmp.eq.s32.totalorder %v127_v46, %v3456_v33 }
  0xcf   :  { %v2607_v50 = vsel %vm135_vm10, 1.0, %v3274_v36 }
  0xd0   :  { %v159_v56 = vadd.f32 %v2607_v50, %v2599_v54 }
  0xd2   :  { %v180_v47 = vpop.permute.xlu1 %179  ;;  %v215_v62 = vadd.f32 %v2615_v60, %v159_v56 }
  0xd3   :  { %vm190_vm11 = vcmp.eq.s32.totalorder %v180_v47, %v3456_v33 }
  0xd4   :  { %v2614_v52 = vsel %vm190_vm11, 1.0, %v3274_v36 }
  0xd5   :  { %v214_v57 = vadd.f32 %v2614_v52, %v158_v53 }
  0xd7   :  { %v236_v55 = vpop.permute.xlu1 %235 }
  0xd8   :  { %vm246_vm14 = vcmp.eq.s32.totalorder %v236_v55, %v3456_v33 }
  0xd9   :  { %v2622_v58 = vsel %vm246_vm14, 1.0, %v3274_v36 }
  0xda   :  { %v270_v59 = vadd.f32 %v2622_v58, %v214_v57 }
  0xdb   :  { %v239_v61 = vpop.permute.xlu1 %238 }
  0xdc   :  { %v278_v63 = vmul.f32 0.25, %v270_v59  ;;  %vm247_vm15 = vcmp.eq.s32.totalorder %v239_v61, %v3456_v33 }
  0xdd   :  { %v2623_v0 = vsel %vm247_vm15, 1.0, %v3274_v36 }
  0xde   :  { %v271_v1 = vadd.f32 %v2623_v0, %v215_v62  ;;  %2862 = vmatprep.mubr.f32.mxu0 %v278_v63 }
  0xe0   :  { %v279_v2 = vmul.f32 0.25, %v271_v1 }
  0xe2   :  { %2863 = vmatmul.mubr.f32.gmra.mxu0 %v279_v2 }
 0x169   :  { %v2855_v33 = vpop.f32.mrf.mxu0 }
 0x16b   :  { %v362_v5 = vpop.f32.mrf.mxu0 }
 0x16c   :  { %2873 = vmatprep.mubr.msk.f32.mxu0 %vm412_vm0, %v362_v5 }
 0x16d   :  { %v2858_v6 = vpop.f32.mrf.mxu0  ;;  %2874 = vmatmul.mubr.msk.f32.vlgmr.msra.gmra.mxu0 %vm412_vm0, %v2855_v33 }
 0x16e   :  { %2919 = vmatpush3.msra.mxu0 %v3544_v7 }
 0x16f   :  { %v372_v8 = vpop.f32.mrf.mxu0  ;;  %2920 = vmatprep.subr.mxu0 %v3274_v36 }
 0x170   :  { %2876 = vmatprep.mubr.msk.f32.mxu0 %vm412_vm0, %v372_v8  ;;  %2921 = vmatpush3.msra.mxu0 %v3550_v9 }
 0x171   :  { %2877 = vmatmul.mubr.msk.f32.gmra.mxu0 %vm412_vm0, %v2858_v6  ;;  %2922 = vmatprep.subr.mxu0 %v3274_v36 }
 0x172   :  { %2923 = vmatpush3.msra.mxu0 %v3559_v10  ;;  %2926 = vmatprep.mubr.msk.f32.mxu0 %vm3275_vm1, %v3274_v36 }
 0x173   :  { %2924 = vmatprep.subr.mxu0 %v3274_v36 }
 0x174   :  { %2925 = vmatpush3.msra.mxu0 %v3568_v11 }
 0x175   :  { %2940 = vmatprep.subr.mxu0 %v3274_v36 }
 0x183   :  { %v2861_v12 = vpop.f32.mrf.mxu0 }
 0x185   :  { %v382_v13 = vpop.f32.mrf.mxu0 }
 0x186   :  { %2879 = vmatprep.mubr.msk.f32.mxu1 %vm412_vm0, %v382_v13 }
 0x187   :  { %2880 = vmatmul.mubr.msk.f32.vlgmr.msra.gmra.mxu1 %vm412_vm0, %v2861_v12 }
 0x188   :  { %2886 = vmatpush3.msra.mxu1 %v3544_v7 }
 0x189   :  { %2887 = vmatprep.subr.mxu1 %v3274_v36 }
 0x18a   :  { %2888 = vmatpush3.msra.mxu1 %v3550_v9 }
 0x18b   :  { %2889 = vmatprep.subr.mxu1 %v3274_v36 }
 0x18c   :  { %2890 = vmatpush3.msra.mxu1 %v3559_v10 }
 0x18d   :  { %2891 = vmatprep.subr.mxu1 %v3274_v36 }
 0x18e   :  { %2892 = vmatpush3.msra.mxu1 %v3568_v11 }
 0x18f   :  { %2896 = vmatprep.subr.mxu1 %v3274_v36 }
 0x1a2   :  { %v2864_v14 = vpop.f32.mrf.mxu0 }
 0x1a4   :  { %v392_v15 = vpop.f32.mrf.mxu0 }
 0x1a5   :  { %2882 = vmatprep.mubr.msk.f32.mxu1 %vm412_vm0, %v392_v15 }
 0x1a6   :  { %2883 = vmatmul.mubr.msk.f32.gmra.mxu1 %vm412_vm0, %v2864_v14 }
 0x1a7   :  { %2893 = vmatprep.mubr.msk.f32.mxu1 %vm3275_vm1, %v3274_v36 }
 0x1aa   :  { %2894 = vmatmul.mubr.f32.vlgmr.msra.gmra.mxu1 %v3274_v36 }
 0x1ab   :  { %2897 = vmatpush3.msra.mxu1 %v3544_v7  ;;  %2904 = vmatprep.mubr.msk.f32.mxu1 %vm3275_vm1, %v3274_v36 }
 0x1ac   :  { %2898 = vmatprep.subr.mxu1 %v3274_v36 }
 0x1ad   :  { %2899 = vmatpush3.msra.mxu1 %v3550_v9 }
 0x1ae   :  { %2900 = vmatprep.subr.mxu1 %v3274_v36 }
 0x1af   :  { %2901 = vmatpush3.msra.mxu1 %v3559_v10 }
 0x1b0   :  { %2902 = vmatprep.subr.mxu1 %v3274_v36 }
 0x1b1   :  { %2903 = vmatpush3.msra.mxu1 %v3568_v11 }
 0x1b2   :  { %2907 = vmatprep.subr.mxu1 %v3274_v36 }
 0x22d   :  { %v2875_v17 = vpop.f32.mrf.mxu0 }
 0x22e   :  { %v509_v18 = vadd.f32 %v2875_v17, %v3601_v16 }
 0x22f   :  { %v503_v19 = vpop.f32.mrf.mxu0 }
 0x230   :  { %v504_v29 = vadd.f32 %v3601_v16, %v503_v19 }
 0x231   :  { %v2878_v20 = vpop.f32.mrf.mxu0 }
 0x232   :  { %v3605_v21 = vadd.f32 %v2878_v20, %v3601_v16 }
 0x233   :  { %v513_v3 = vpop.f32.mrf.mxu0 }
 0x234   :  { %v514_v4 = vadd.f32 %v3601_v16, %v513_v3 }
 0x247   :  { %v2881_v22 = vpop.f32.mrf.mxu1 }
 0x248   :  { %v3608_v23 = vadd.f32 %v2881_v22, %v3601_v16 }
 0x249   :  { %v523_v24 = vpop.f32.mrf.mxu1 }
 0x24a   :  { %v3611_v25 = vadd.f32 %v3601_v16, %v523_v24 }
 0x266   :  { %v2884_v26 = vpop.f32.mrf.mxu1 }
 0x267   :  { %v3614_v27 = vadd.f32 %v2884_v26, %v3601_v16 }
 0x268   :  { %v533_v28 = vpop.f32.mrf.mxu1 }
 0x269   :  { %v3618_v30 = vadd.f32 %v3601_v16, %v533_v28 }
 0x26a   :  { %v624_v31 = vpop.f32.mrf.mxu1 }
 0x26b   :  { %v628_v32 = vadd.f32 %v624_v31, %v504_v29 }
 0x26c   :  { %v2895_v34 = vpop.f32.mrf.mxu1 }
 0x26d   :  { %3142 = vtanh.f32 %v628_v32  ;;  %v2633_v37 = vmul.f32 -1.442695, %v628_v32 }
 0x26f   :  { %3144 = vpow2.f32 %v2633_v37 }
 0x27a   :  { %v3143_v35 = vpop.eup %3142 }
 0x27b   :  { %638 = vrot.lane.b32.xlu0 %v3143_v35, %s3276_s5 }
 0x27c   :  { %v3145_v38 = vpop.eup %3144 }
 0x27d   :  { %v632_v39 = vadd.f32 1.0, %v3145_v38 }
 0x27f   :  { %3146 = vrcp.f32 %v632_v39 }
 0x28c   :  { %v3147_v40 = vpop.eup %3146 }
 0x28d   :  { %v636_v43 = vmul.f32 0.0, %v3147_v40 }
 0x2ed   :  { %v639_v41 = vpop.permute.xlu0 %638 }
 0x2ee   :  { %v641_v42 = vmul.f32 %v3147_v40, %v639_v41 }
 0x2f0   :  { %643 = vrot.lane.b32.xlu1 %v641_v42, %s3277_s22 }
 0x362   :  { %v644_v44 = vpop.permute.xlu1 %643 }
 0x363   :  { %v646_v45 = vadd.f32 %v644_v44, %v636_v43 }
 0x365   :  { %3148 = vtanh.f32 %v646_v45 }
 0x372   :  { %v3149_v46 = vpop.eup %3148 }
 0x373   :  { %649 = vrot.lane.b32.xlu0 %v3149_v46, %s3276_s5 }
 0x3e5   :  { %v650_v47 = vpop.permute.xlu0 %649 }
 0x3e6   :  { %v652_v48 = vmul.f32 %v3147_v40, %v650_v47 }
 0x3e8   :  { %654 = vrot.lane.b32.xlu1 %v652_v48, %s3277_s22 }
 0x45a   :  { %v655_v49 = vpop.permute.xlu1 %654 }
 0x45b   :  { %657 = vst.msk [vmem:[#allocation3] sm:$0xff] %vm412_vm0, %v655_v49  ;;  %2905 = vmatmul.mubr.msk.f32.vlgmr.msra.gmra.mxu1 %vm412_vm0, %v655_v49 }
 0x45c   :  { %2908 = vmatpush3.msra.mxu1 %v3544_v7  ;;  %2915 = vmatprep.mubr.msk.f32.mxu1 %vm3275_vm1, %v3274_v36 }
 0x45d   :  { %2909 = vmatprep.subr.mxu1 %v3274_v36 }
 0x45e   :  { %2910 = vmatpush3.msra.mxu1 %v3550_v9 }
 0x45f   :  { %2911 = vmatprep.subr.mxu1 %v3274_v36 }
 0x460   :  { %2912 = vmatpush3.msra.mxu1 %v3559_v10 }
 0x461   :  { %2913 = vmatprep.subr.mxu1 %v3274_v36 }
 0x462   :  { %2914 = vmatpush3.msra.mxu1 %v3568_v11 }
 0x463   :  { %2929 = vmatprep.subr.mxu1 %v3274_v36 }
 0x51b   :  { %v728_v50 = vpop.f32.mrf.mxu1 }
 0x51c   :  { %v732_v51 = vadd.f32 %v728_v50, %v509_v18 }
 0x51d   :  { %v2906_v52 = vpop.f32.mrf.mxu1 }
 0x51e   :  { %3150 = vtanh.f32 %v732_v51  ;;  %v2635_v54 = vmul.f32 -1.442695, %v732_v51 }
 0x520   :  { %3152 = vpow2.f32 %v2635_v54 }
 0x52b   :  { %v3151_v53 = vpop.eup %3150 }
 0x52c   :  { %742 = vrot.lane.b32.xlu0 %v3151_v53, %s3276_s5 }
 0x52d   :  { %v3153_v55 = vpop.eup %3152 }
 0x52e   :  { %v736_v56 = vadd.f32 1.0, %v3153_v55 }
 0x530   :  { %3154 = vrcp.f32 %v736_v56 }
 0x53d   :  { %v3155_v57 = vpop.eup %3154 }
 0x53e   :  { %v740_v60 = vmul.f32 %v3155_v57, %v646_v45 }
 0x59e   :  { %v743_v58 = vpop.permute.xlu0 %742 }
 0x59f   :  { %v745_v59 = vmul.f32 %v3155_v57, %v743_v58 }
 0x5a1   :  { %747 = vrot.lane.b32.xlu1 %v745_v59, %s3277_s22 }
 0x613   :  { %v748_v61 = vpop.permute.xlu1 %747 }
 0x614   :  { %v750_v62 = vadd.f32 %v748_v61, %v740_v60 }
 0x616   :  { %3156 = vtanh.f32 %v750_v62 }
 0x623   :  { %v3157_v63 = vpop.eup %3156 }
 0x624   :  { %753 = vrot.lane.b32.xlu0 %v3157_v63, %s3276_s5 }
 0x696   :  { %v754_v0 = vpop.permute.xlu0 %753 }
 0x697   :  { %v756_v1 = vmul.f32 %v3155_v57, %v754_v0 }
 0x699   :  { %758 = vrot.lane.b32.xlu1 %v756_v1, %s3277_s22 }
 0x70b   :  { %v759_v2 = vpop.permute.xlu1 %758 }
 0x70c   :  { %762 = vst.msk [vmem:[#allocation3 + $0x8] sm:$0xff] %vm412_vm0, %v759_v2  ;;  %2916 = vmatmul.mubr.msk.f32.vlgmr.msra.gmra.mxu1 %vm412_vm0, %v759_v2 }
 0x70d   :  { %2930 = vmatpush3.msra.mxu1 %v3544_v7  ;;  %2937 = vmatprep.mubr.msk.f32.mxu1 %vm3275_vm1, %v3274_v36 }
 0x70e   :  { %2931 = vmatprep.subr.mxu1 %v3274_v36 }
 0x70f   :  { %2932 = vmatpush3.msra.mxu1 %v3550_v9 }
 0x710   :  { %2933 = vmatprep.subr.mxu1 %v3274_v36 }
 0x711   :  { %2934 = vmatpush3.msra.mxu1 %v3559_v10 }
 0x712   :  { %2935 = vmatprep.subr.mxu1 %v3274_v36 }
 0x713   :  { %2936 = vmatpush3.msra.mxu1 %v3568_v11 }
 0x714   :  { %2951 = vmatprep.subr.mxu1 %v3274_v36 }
 0x7cc   :  { %v833_v33 = vpop.f32.mrf.mxu1 }
 0x7cd   :  { %v837_v5 = vadd.f32 %v833_v33, %v514_v4 }
 0x7ce   :  { %v2917_v6 = vpop.f32.mrf.mxu1 }
 0x7cf   :  { %3158 = vtanh.f32 %v837_v5  ;;  %v2637_v12 = vmul.f32 -1.442695, %v837_v5 }
 0x7d1   :  { %3160 = vpow2.f32 %v2637_v12 }
 0x7dc   :  { %v3159_v8 = vpop.eup %3158 }
 0x7dd   :  { %847 = vrot.lane.b32.xlu0 %v3159_v8, %s3276_s5 }
 0x7de   :  { %v3161_v13 = vpop.eup %3160 }
 0x7df   :  { %v841_v14 = vadd.f32 1.0, %v3161_v13 }
 0x7e1   :  { %3162 = vrcp.f32 %v841_v14 }
 0x7ee   :  { %v3163_v15 = vpop.eup %3162 }
 0x7ef   :  { %v845_v19 = vmul.f32 %v3163_v15, %v750_v62 }
 0x84f   :  { %v848_v17 = vpop.permute.xlu0 %847 }
 0x850   :  { %v850_v18 = vmul.f32 %v3163_v15, %v848_v17  ;;  %v1403_v17 = vld [vmem:[%s4005_s6 + $0x10] sm:$0xff] }
 0x852   :  { %852 = vrot.lane.b32.xlu1 %v850_v18, %s3277_s22  ;;  %v1393_v18 = vld [vmem:[#allocation3] sm:$0xff] }
 0x8c4   :  { %v853_v20 = vpop.permute.xlu1 %852 }
 0x8c5   :  { %v855_v16 = vadd.f32 %v853_v20, %v845_v19  ;;  %v1402_v19 = vld [vmem:[%s4005_s6 + $0x8] sm:$0xff]  ;;  %v1401_v20 = vld [vmem:[%s4005_s6] sm:$0xff] }
 0x8c7   :  { %3164 = vtanh.f32 %v855_v16 }
 0x8d4   :  { %v3165_v22 = vpop.eup %3164 }
 0x8d5   :  { %858 = vrot.lane.b32.xlu0 %v3165_v22, %s3276_s5 }
 0x947   :  { %v859_v24 = vpop.permute.xlu0 %858 }
 0x948   :  { %v861_v26 = vmul.f32 %v3163_v15, %v859_v24 }
 0x94a   :  { %863 = vrot.lane.b32.xlu1 %v861_v26, %s3277_s22 }
 0x9bc   :  { %v864_v28 = vpop.permute.xlu1 %863 }
 0x9bd   :  { %867 = vst.msk [vmem:[#allocation3 + $0x10] sm:$0xff] %vm412_vm0, %v864_v28  ;;  %2927 = vmatmul.mubr.msk.f32.vlgmr.msra.gmra.mxu0 %vm412_vm0, %v864_v28 }
 0x9be   :  { %2941 = vmatpush3.msra.mxu0 %v3544_v7  ;;  %2948 = vmatprep.mubr.msk.f32.mxu0 %vm3275_vm1, %v3274_v36 }
 0x9bf   :  { %2942 = vmatprep.subr.mxu0 %v3274_v36 }
 0x9c0   :  { %2943 = vmatpush3.msra.mxu0 %v3550_v9 }
 0x9c1   :  { %2944 = vmatprep.subr.mxu0 %v3274_v36 }
 0x9c2   :  { %2945 = vmatpush3.msra.mxu0 %v3559_v10 }
 0x9c3   :  { %2946 = vmatprep.subr.mxu0 %v3274_v36 }
 0x9c4   :  { %2947 = vmatpush3.msra.mxu0 %v3568_v11  ;;  %v1395_v22 = vld [vmem:[#allocation3 + $0x10] sm:$0xff] }
 0x9c5   :  { %2962 = vmatprep.subr.mxu0 %v3274_v36 }
 0xa7d   :  { %v938_v29 = vpop.f32.mrf.mxu0 }
 0xa7e   :  { %v942_v31 = vadd.f32 %v938_v29, %v3605_v21 }
 0xa7f   :  { %v2928_v32 = vpop.f32.mrf.mxu0 }
 0xa80   :  { %3166 = vtanh.f32 %v942_v31  ;;  %v2639_v35 = vmul.f32 -1.442695, %v942_v31 }
 0xa82   :  { %3168 = vpow2.f32 %v2639_v35 }
 0xa8d   :  { %v3167_v34 = vpop.eup %3166 }
 0xa8e   :  { %952 = vrot.lane.b32.xlu0 %v3167_v34, %s3276_s5 }
 0xa8f   :  { %v3169_v37 = vpop.eup %3168 }
 0xa90   :  { %v946_v38 = vadd.f32 1.0, %v3169_v37 }
 0xa92   :  { %3170 = vrcp.f32 %v946_v38 }
 0xa9f   :  { %v3171_v39 = vpop.eup %3170 }
 0xaa0   :  { %v950_v42 = vmul.f32 %v3171_v39, %v855_v16  ;;  %v1394_v16 = vld [vmem:[#allocation3 + $0x8] sm:$0xff] }
 0xb00   :  { %v953_v40 = vpop.permute.xlu0 %952 }
 0xb01   :  { %v955_v41 = vmul.f32 %v3171_v39, %v953_v40 }
 0xb03   :  { %957 = vrot.lane.b32.xlu1 %v955_v41, %s3277_s22 }
 0xb75   :  { %v958_v43 = vpop.permute.xlu1 %957 }
 0xb76   :  { %v960_v44 = vadd.f32 %v958_v43, %v950_v42 }
 0xb78   :  { %3172 = vtanh.f32 %v960_v44 }
 0xb85   :  { %v3173_v21 = vpop.eup %3172 }
 0xb86   :  { %963 = vrot.lane.b32.xlu0 %v3173_v21, %s3276_s5  ;;  %v3738_v21 = vld [vmem:[%s4006_s7 + $0x18] sm:$0xff] }
 0xbf8   :  { %v964_v45 = vpop.permute.xlu0 %963 }
 0xbf9   :  { %v966_v46 = vmul.f32 %v3171_v39, %v964_v45  ;;  %v3744_v45 = vld [vmem:[%s4006_s7 + $0x10] sm:$0xff] }
 0xbfb   :  { %968 = vrot.lane.b32.xlu1 %v966_v46, %s3277_s22  ;;  %v3751_v46 = vld [vmem:[%s4006_s7 + $0x8] sm:$0xff] }
 0xc6d   :  { %v969_v47 = vpop.permute.xlu1 %968 }
 0xc6e   :  { %972 = vst.msk [vmem:[#allocation3 + $0x18] sm:$0xff] %vm412_vm0, %v969_v47  ;;  %2938 = vmatmul.mubr.msk.f32.vlgmr.msra.gmra.mxu1 %vm412_vm0, %v969_v47  ;;  %v3758_v47 = vld [vmem:[%s4006_s7] sm:$0xff] }
 0xc6f   :  { %2952 = vmatpush3.msra.mxu1 %v3544_v7  ;;  %2959 = vmatprep.mubr.msk.f32.mxu1 %vm3275_vm1, %v3274_v36 }
 0xc70   :  { %2953 = vmatprep.subr.mxu1 %v3274_v36 }
 0xc71   :  { %2954 = vmatpush3.msra.mxu1 %v3550_v9 }
 0xc72   :  { %2955 = vmatprep.subr.mxu1 %v3274_v36 }
 0xc73   :  { %2956 = vmatpush3.msra.mxu1 %v3559_v10 }
 0xc74   :  { %2957 = vmatprep.subr.mxu1 %v3274_v36 }
 0xc75   :  { %2958 = vmatpush3.msra.mxu1 %v3568_v11  ;;  %v1396_v24 = vld [vmem:[#allocation3 + $0x18] sm:$0xff] }
 0xd2e   :  { %v1043_v48 = vpop.f32.mrf.mxu1 }
 0xd2f   :  { %v1047_v49 = vadd.f32 %v1043_v48, %v3611_v25 }
 0xd30   :  { %v2939_v50 = vpop.f32.mrf.mxu1 }
 0xd31   :  { %3174 = vtanh.f32 %v1047_v49  ;;  %v2641_v52 = vmul.f32 -1.442695, %v1047_v49 }
 0xd33   :  { %3176 = vpow2.f32 %v2641_v52 }
 0xd3e   :  { %v3175_v51 = vpop.eup %3174 }
 0xd3f   :  { %1057 = vrot.lane.b32.xlu0 %v3175_v51, %s3276_s5 }
 0xd40   :  { %v3177_v53 = vpop.eup %3176 }
 0xd41   :  { %v1051_v54 = vadd.f32 1.0, %v3177_v53 }
 0xd43   :  { %3178 = vrcp.f32 %v1051_v54 }
 0xd50   :  { %v3179_v55 = vpop.eup %3178 }
 0xd51   :  { %v1055_v58 = vmul.f32 %v3179_v55, %v960_v44 }
 0xdb1   :  { %v1058_v56 = vpop.permute.xlu0 %1057 }
 0xdb2   :  { %v1060_v57 = vmul.f32 %v3179_v55, %v1058_v56 }
 0xdb4   :  { %1062 = vrot.lane.b32.xlu1 %v1060_v57, %s3277_s22  ;;  %v3794_v57 = vld [vmem:[%s4007_s8] ss:$0 sm:$0xff] }
 0xe26   :  { %v1063_v59 = vpop.permute.xlu1 %1062 }
 0xe27   :  { %v1065_v60 = vadd.f32 %v1063_v59, %v1055_v58 }
 0xe29   :  { %3180 = vtanh.f32 %v1065_v60 }
 0xe36   :  { %v3181_v25 = vpop.eup %3180 }
 0xe37   :  { %1068 = vrot.lane.b32.xlu0 %v3181_v25, %s3276_s5 }
 0xea9   :  { %v1069_v61 = vpop.permute.xlu0 %1068 }
 0xeaa   :  { %v1071_v62 = vmul.f32 %v3179_v55, %v1069_v61 }
 0xeac   :  { %1073 = vrot.lane.b32.xlu1 %v1071_v62, %s3277_s22 }
 0xf1e   :  { %v1074_v63 = vpop.permute.xlu1 %1073 }
 0xf1f   :  { %1077 = vst.msk [vmem:[#allocation3 + $0x20] sm:$0xff] %vm412_vm0, %v1074_v63  ;;  %2949 = vmatmul.mubr.msk.f32.vlgmr.msra.gmra.mxu0 %vm412_vm0, %v1074_v63 }
 0xf20   :  { %2963 = vmatpush3.msra.mxu0 %v3544_v7  ;;  %2970 = vmatprep.mubr.msk.f32.mxu0 %vm3275_vm1, %v3274_v36 }
 0xf21   :  { %2964 = vmatprep.subr.mxu0 %v3274_v36 }
 0xf22   :  { %2965 = vmatpush3.msra.mxu0 %v3550_v9 }
 0xf23   :  { %2966 = vmatprep.subr.mxu0 %v3274_v36 }
 0xf24   :  { %2967 = vmatpush3.msra.mxu0 %v3559_v10 }
 0xf25   :  { %2968 = vmatprep.subr.mxu0 %v3274_v36 }
 0xf26   :  { %2969 = vmatpush3.msra.mxu0 %v3568_v11  ;;  %v1397_v26 = vld [vmem:[#allocation3 + $0x20] sm:$0xff] }
 0xf27   :  { %2993 = vmatprep.subr.mxu0 %v3274_v36 }
 0xfdf   :  { %v1148_v0 = vpop.f32.mrf.mxu0 }
 0xfe0   :  { %v1152_v7 = vadd.f32 %v1148_v0, %v3608_v23  ;;  %v1404_v23 = vld [vmem:[%s4005_s6 + $0x18] sm:$0xff] }
 0xfe1   :  { %v2950_v1 = vpop.f32.mrf.mxu0  ;;  %2973 = vmatprep.subr.mxu1 %v1404_v23 }
 0xfe2   :  { %3182 = vtanh.f32 %v1152_v7  ;;  %v2643_v3 = vmul.f32 -1.442695, %v1152_v7 }
 0xfe4   :  { %3184 = vpow2.f32 %v2643_v3 }
 0xfef   :  { %v3183_v2 = vpop.eup %3182 }
 0xff0   :  { %1162 = vrot.lane.b32.xlu0 %v3183_v2, %s3276_s5 }
 0xff1   :  { %v3185_v9 = vpop.eup %3184 }
 0xff2   :  { %v1156_v4 = vadd.f32 1.0, %v3185_v9 }
 0xff4   :  { %3186 = vrcp.f32 %v1156_v4 }
0x1001   :  { %v3187_v10 = vpop.eup %3186 }
0x1002   :  { %v1160_v11 = vmul.f32 %v3187_v10, %v1065_v60 }
0x1062   :  { %v1163_v33 = vpop.permute.xlu0 %1162 }
0x1063   :  { %v1165_v5 = vmul.f32 %v3187_v10, %v1163_v33 }
0x1065   :  { %1167 = vrot.lane.b32.xlu1 %v1165_v5, %s3277_s22 }
0x10d7   :  { %v1168_v6 = vpop.permute.xlu1 %1167 }
0x10d8   :  { %v1170_v8 = vadd.f32 %v1168_v6, %v1160_v11 }
0x10da   :  { %3188 = vtanh.f32 %v1170_v8 }
0x10e7   :  { %v3189_v12 = vpop.eup %3188 }
0x10e8   :  { %1173 = vrot.lane.b32.xlu0 %v3189_v12, %s3276_s5 }
0x115a   :  { %v1174_v13 = vpop.permute.xlu0 %1173 }
0x115b   :  { %v1176_v14 = vmul.f32 %v3187_v10, %v1174_v13 }
0x115d   :  { %1178 = vrot.lane.b32.xlu1 %v1176_v14, %s3277_s22 }
0x11cf   :  { %v1179_v15 = vpop.permute.xlu1 %1178 }
0x11d0   :  { %1182 = vst.msk [vmem:[#allocation3 + $0x28] sm:$0xff] %vm412_vm0, %v1179_v15  ;;  %2960 = vmatmul.mubr.msk.f32.vlgmr.msra.gmra.mxu1 %vm412_vm0, %v1179_v15 }
0x11d1   :  { %2974 = vmatpush3.msra.mxu1 %v1404_v23  ;;  %2981 = vmatprep.mubr.msk.f32.mxu1 %vm412_vm0, %v1393_v18 }
0x11d2   :  { %2975 = vmatprep.subr.mxu1 %v1403_v17 }
0x11d3   :  { %2976 = vmatpush3.msra.mxu1 %v1403_v17 }
0x11d4   :  { %2977 = vmatprep.subr.mxu1 %v1402_v19 }
0x11d5   :  { %2978 = vmatpush3.msra.mxu1 %v1402_v19 }
0x11d6   :  { %2979 = vmatprep.subr.mxu1 %v1401_v20 }
0x11d7   :  { %2980 = vmatpush3.msra.mxu1 %v1401_v20  ;;  %v1398_v28 = vld [vmem:[#allocation3 + $0x28] sm:$0xff] }
0x11d8   :  { %2982 = vmatmul.mubr.msk.f32.vlgmr.msra.gmra.mxu1 %vm412_vm0, %v1394_v16  ;;  %3015 = vmatprep.subr.mxu1 %v3274_v36 }
0x11d9   :  { %2984 = vmatprep.mubr.msk.f32.mxu1 %vm412_vm0, %v1395_v22  ;;  %3016 = vmatpush3.msra.mxu1 %v3738_v21 }
0x11da   :  { %3017 = vmatprep.subr.mxu1 %v3274_v36 }
0x11db   :  { %3018 = vmatpush3.msra.mxu1 %v3744_v45 }
0x11dc   :  { %2985 = vmatmul.mubr.msk.f32.gmra.mxu1 %vm412_vm0, %v1396_v24  ;;  %3019 = vmatprep.subr.mxu1 %v3274_v36 }
0x11dd   :  { %2987 = vmatprep.mubr.msk.f32.mxu1 %vm412_vm0, %v1397_v26  ;;  %3020 = vmatpush3.msra.mxu1 %v3751_v46 }
0x11de   :  { %3021 = vmatprep.subr.mxu1 %v3274_v36 }
0x11df   :  { %3022 = vmatpush3.msra.mxu1 %v3758_v47 }
0x11e0   :  { %2988 = vmatmul.mubr.msk.f32.gmra.mxu1 %vm412_vm0, %v1398_v28  ;;  %3037 = vmatprep.subr.mxu1 %v3274_v36 }
0x1290   :  { %v1253_v29 = vpop.f32.mrf.mxu1 }
0x1291   :  { %v1257_v31 = vadd.f32 %v1253_v29, %v3618_v30 }
0x1292   :  { %v2961_v32 = vpop.f32.mrf.mxu1 }
0x1293   :  { %3190 = vtanh.f32 %v1257_v31  ;;  %v2645_v35 = vmul.f32 -1.442695, %v1257_v31 }
0x1295   :  { %3192 = vpow2.f32 %v2645_v35 }
0x1298   :  { %v3788_v52 = vpop.f32.mrf.mxu1 }
0x1299   :  { %v1508_v22 = vadd.f32 %v3788_v52, %v3794_v57 }
0x129a   :  { %v1502_v56 = vpop.f32.mrf.mxu1 }
0x129b   :  { %v1503_v58 = vadd.f32 %v3794_v57, %v1502_v56 }
0x12a0   :  { %v3191_v34 = vpop.eup %3190 }
0x12a1   :  { %1267 = vrot.lane.b32.xlu0 %v3191_v34, %s3276_s5 }
0x12a2   :  { %v3193_v37 = vpop.eup %3192 }
0x12a3   :  { %v1261_v38 = vadd.f32 1.0, %v3193_v37 }
0x12a5   :  { %3194 = vrcp.f32 %v1261_v38 }
0x12b2   :  { %v3195_v39 = vpop.eup %3194 }
0x12b3   :  { %v1265_v42 = vmul.f32 %v3195_v39, %v1170_v8 }
0x1313   :  { %v1268_v40 = vpop.permute.xlu0 %1267 }
0x1314   :  { %v1270_v41 = vmul.f32 %v3195_v39, %v1268_v40 }
0x1316   :  { %1272 = vrot.lane.b32.xlu1 %v1270_v41, %s3277_s22 }
0x1388   :  { %v1273_v43 = vpop.permute.xlu1 %1272 }
0x1389   :  { %v3731_v44 = vadd.f32 %v1273_v43, %v1265_v42 }
0x138b   :  { %3196 = vtanh.f32 %v3731_v44 }
0x1398   :  { %v3197_v30 = vpop.eup %3196 }
0x1399   :  { %1278 = vrot.lane.b32.xlu0 %v3197_v30, %s3276_s5 }
0x140b   :  { %v1279_v48 = vpop.permute.xlu0 %1278 }
0x140c   :  { %v1281_v49 = vmul.f32 %v3195_v39, %v1279_v48 }
0x140e   :  { %1283 = vrot.lane.b32.xlu1 %v1281_v49, %s3277_s22 }
0x1480   :  { %v1284_v50 = vpop.permute.xlu1 %1283 }
0x1481   :  { %1287 = vst.msk [vmem:[#allocation3 + $0x30] sm:$0xff] %vm412_vm0, %v1284_v50  ;;  %2971 = vmatmul.mubr.msk.f32.vlgmr.msra.gmra.mxu0 %vm412_vm0, %v1284_v50  ;;  %v2986_v50 = vpop.f32.mrf.mxu1 }
0x1482   :  { %2994 = vmatpush3.msra.mxu0 %v3738_v21  ;;  %3001 = vmatprep.mubr.msk.f32.mxu0 %vm3275_vm1, %v3274_v36 }
0x1483   :  { %2995 = vmatprep.subr.mxu0 %v3274_v36 }
0x1484   :  { %2996 = vmatpush3.msra.mxu0 %v3744_v45 }
0x1485   :  { %2997 = vmatprep.subr.mxu0 %v3274_v36 }
0x1486   :  { %2998 = vmatpush3.msra.mxu0 %v3751_v46 }
0x1487   :  { %2999 = vmatprep.subr.mxu0 %v3274_v36 }
0x1488   :  { %3000 = vmatpush3.msra.mxu0 %v3758_v47  ;;  %v1399_v51 = vld [vmem:[#allocation3 + $0x30] sm:$0xff] }
0x1489   :  { %3002 = vmatmul.mubr.f32.vlgmr.msra.gmra.mxu0 %v3274_v36  ;;  %2990 = vmatprep.mubr.msk.f32.mxu1 %vm412_vm0, %v1399_v51  ;;  %v1512_v51 = vpop.f32.mrf.mxu1 }
0x148a   :  { %3004 = vmatprep.subr.mxu0 %v3274_v36  ;;  %3012 = vmatprep.mubr.msk.f32.mxu0 %vm3275_vm1, %v3274_v36  ;;  %v1513_v56 = vadd.f32 %v3794_v57, %v1512_v51 }
0x148b   :  { %3005 = vmatpush3.msra.mxu0 %v3738_v21  ;;  %v3840_v52 = vpop.f32.mrf.mxu1 }
0x148c   :  { %3006 = vmatprep.subr.mxu0 %v3274_v36 }
0x148d   :  { %3007 = vmatpush3.msra.mxu0 %v3744_v45 }
0x148e   :  { %3008 = vmatprep.subr.mxu0 %v3274_v36 }
0x148f   :  { %3009 = vmatpush3.msra.mxu0 %v3751_v46 }
0x1490   :  { %3010 = vmatprep.subr.mxu0 %v3274_v36 }
0x1491   :  { %3011 = vmatpush3.msra.mxu0 %v3758_v47 }
0x1492   :  { %3026 = vmatprep.subr.mxu0 %v3274_v36 }
0x1541   :  { %v1358_v53 = vpop.f32.mrf.mxu0 }
0x1542   :  { %v1362_v54 = vadd.f32 %v1358_v53, %v3614_v27  ;;  %v3842_v53 = vpop.f32.mrf.mxu1 }
0x1543   :  { %v2972_v55 = vpop.f32.mrf.mxu0 }
0x1544   :  { %v2647_v33 = vmul.f32 -1.442695, %v1362_v54 }
0x1549   :  { %v1620_v59 = vpop.f32.mrf.mxu0 }
0x154a   :  { %v1624_v60 = vadd.f32 %v1620_v59, %v1503_v58 }
0x154b   :  { %v3003_v25 = vpop.f32.mrf.mxu0 }
0x154c   :  { %3198 = vtanh.f32 %v1624_v60  ;;  %v2657_v62 = vmul.f32 -1.442695, %v1624_v60 }
0x154e   :  { %3200 = vpow2.f32 %v2657_v62 }
0x1559   :  { %v3199_v61 = vpop.eup %3198 }
0x155a   :  { %1634 = vrot.lane.b32.xlu0 %v3199_v61, %s3276_s5 }
0x155b   :  { %v3201_v63 = vpop.eup %3200 }
0x155c   :  { %v1628_v27 = vadd.f32 1.0, %v3201_v63 }
0x155e   :  { %3202 = vrcp.f32 %v1628_v27 }
0x156b   :  { %v3203_v0 = vpop.eup %3202 }
0x156c   :  { %v1632_v2 = vmul.f32 0.0, %v3203_v0 }
0x15cc   :  { %v1635_v7 = vpop.permute.xlu0 %1634 }
0x15cd   :  { %v1637_v1 = vmul.f32 %v3203_v0, %v1635_v7 }
0x15cf   :  { %1639 = vrot.lane.b32.xlu1 %v1637_v1, %s3277_s22 }
0x1641   :  { %v1640_v3 = vpop.permute.xlu1 %1639 }
0x1642   :  { %v1642_v9 = vadd.f32 %v1640_v3, %v1632_v2 }
0x1644   :  { %3204 = vtanh.f32 %v1642_v9 }
0x1645   :  { %3206 = vtanh.f32 %v1362_v54 }
0x1646   :  { %3208 = vpow2.f32 %v2647_v33 }
0x1651   :  { %v3205_v4 = vpop.eup %3204 }
0x1652   :  { %1645 = vrot.lane.b32.xlu0 %v3205_v4, %s3276_s5  ;;  %v3207_v10 = vpop.eup %3206 }
0x1653   :  { %v3209_v5 = vpop.eup %3208 }
0x1654   :  { %v1366_v11 = vadd.f32 1.0, %v3209_v5  ;;  %v1518_v5 = vadd.f32 %v2986_v50, %v3794_v57 }
0x1656   :  { %1372 = vrot.lane.b32.xlu0 %v3207_v10, %s3276_s5  ;;  %3210 = vrcp.f32 %v1366_v11 }
0x1663   :  { %v3211_v23 = vpop.eup %3210 }
0x1664   :  { %v1370_v15 = vmul.f32 %v3211_v23, %v3731_v44 }
0x16c4   :  { %v1646_v6 = vpop.permute.xlu0 %1645 }
0x16c5   :  { %v1648_v8 = vmul.f32 %v3203_v0, %v1646_v6 }
0x16c7   :  { %1650 = vrot.lane.b32.xlu1 %v1648_v8, %s3277_s22 }
0x16c8   :  { %v1373_v12 = vpop.permute.xlu0 %1372 }
0x16c9   :  { %v1375_v13 = vmul.f32 %v3211_v23, %v1373_v12 }
0x16cb   :  { %1377 = vrot.lane.b32.xlu0 %v1375_v13, %s3277_s22 }
0x1739   :  { %v1651_v14 = vpop.permute.xlu1 %1650 }
0x173a   :  { %1653 = vst.msk [vmem:[#allocation3] sm:$0xff] %vm412_vm0, %v1651_v14  ;;  %3013 = vmatmul.mubr.msk.f32.vlgmr.msra.gmra.mxu0 %vm412_vm0, %v1651_v14 }
0x173b   :  { %3027 = vmatpush3.msra.mxu0 %v3738_v21  ;;  %3034 = vmatprep.mubr.msk.f32.mxu0 %vm3275_vm1, %v3274_v36 }
0x173c   :  { %3028 = vmatprep.subr.mxu0 %v3274_v36 }
0x173d   :  { %v1378_v17 = vpop.permute.xlu0 %1377  ;;  %3029 = vmatpush3.msra.mxu0 %v3744_v45 }
0x173e   :  { %v1380_v18 = vadd.f32 %v1378_v17, %v1370_v15  ;;  %3030 = vmatprep.subr.mxu0 %v3274_v36 }
0x173f   :  { %3031 = vmatpush3.msra.mxu0 %v3751_v46 }
0x1740   :  { %3212 = vtanh.f32 %v1380_v18  ;;  %3032 = vmatprep.subr.mxu0 %v3274_v36 }
0x1741   :  { %3033 = vmatpush3.msra.mxu0 %v3758_v47 }
0x1742   :  { %3048 = vmatprep.subr.mxu0 %v3274_v36 }
0x174d   :  { %v3213_v19 = vpop.eup %3212 }
0x174e   :  { %1383 = vrot.lane.b32.xlu0 %v3213_v19, %s3276_s5 }
0x17c0   :  { %v1384_v20 = vpop.permute.xlu0 %1383 }
0x17c1   :  { %v1386_v16 = vmul.f32 %v3211_v23, %v1384_v20 }
0x17c3   :  { %1388 = vrot.lane.b32.xlu0 %v1386_v16, %s3277_s22 }
0x17fa   :  { %v1723_v24 = vpop.f32.mrf.mxu0 }
0x17fb   :  { %v1727_v26 = vadd.f32 %v1723_v24, %v1508_v22 }
0x17fc   :  { %v3014_v28 = vpop.f32.mrf.mxu0 }
0x17fd   :  { %3214 = vtanh.f32 %v1727_v26  ;;  %v2659_v34 = vmul.f32 -1.442695, %v1727_v26 }
0x17ff   :  { %3216 = vpow2.f32 %v2659_v34 }
0x180a   :  { %v3215_v29 = vpop.eup %3214 }
0x180b   :  { %1737 = vrot.lane.b32.xlu1 %v3215_v29, %s3276_s5  ;;  %v1523_v29 = vadd.f32 %v3794_v57, %v3842_v53  ;;  %v1528_v53 = vadd.f32 %v3840_v52, %v3794_v57 }
0x180c   :  { %v3217_v35 = vpop.eup %3216 }
0x180d   :  { %v1731_v37 = vadd.f32 1.0, %v3217_v35 }
0x180f   :  { %3218 = vrcp.f32 %v1731_v37 }
0x181c   :  { %v3219_v38 = vpop.eup %3218 }
0x181d   :  { %v1735_v41 = vmul.f32 %v3219_v38, %v1642_v9 }
0x1835   :  { %v1389_v31 = vpop.permute.xlu0 %1388 }
0x1836   :  { %1392 = vst.msk [vmem:[#allocation3 + $0x38] sm:$0xff] %vm412_vm0, %v1389_v31 }
0x183d   :  { %v1400_v32 = vld [vmem:[#allocation3 + $0x38] sm:$0xff] }
0x183e   :  { %2991 = vmatmul.mubr.msk.f32.gmra.mxu1 %vm412_vm0, %v1400_v32 }
0x183f   :  { %3023 = vmatprep.mubr.msk.f32.mxu1 %vm3275_vm1, %v3274_v36 }
0x187d   :  { %v1738_v39 = vpop.permute.xlu1 %1737 }
0x187e   :  { %v1740_v40 = vmul.f32 %v3219_v38, %v1738_v39 }
0x1880   :  { %1742 = vrot.lane.b32.xlu1 %v1740_v40, %s3277_s22 }
0x18f2   :  { %v1743_v42 = vpop.permute.xlu1 %1742 }
0x18f3   :  { %v1745_v43 = vadd.f32 %v1743_v42, %v1735_v41 }
0x18f5   :  { %3220 = vtanh.f32 %v1745_v43 }
0x18fe   :  { %v3844_v54 = vpop.f32.mrf.mxu1 }
0x1900   :  { %v3846_v55 = vpop.f32.mrf.mxu1 }
0x1902   :  { %v3221_v44 = vpop.eup %3220 }
0x1903   :  { %1748 = vrot.lane.b32.xlu1 %v3221_v44, %s3276_s5 }
0x1975   :  { %v1749_v30 = vpop.permute.xlu1 %1748 }
0x1976   :  { %v1751_v48 = vmul.f32 %v3219_v38, %v1749_v30 }
0x1978   :  { %1753 = vrot.lane.b32.xlu1 %v1751_v48, %s3277_s22 }
0x19ea   :  { %v1754_v49 = vpop.permute.xlu1 %1753 }
0x19eb   :  { %1756 = vst.msk [vmem:[#allocation3 + $0x8] sm:$0xff] %vm412_vm0, %v1754_v49  ;;  %3024 = vmatmul.mubr.msk.f32.vlgmr.msra.gmra.mxu1 %vm412_vm0, %v1754_v49 }
0x19ec   :  { %3038 = vmatpush3.msra.mxu1 %v3738_v21  ;;  %3045 = vmatprep.mubr.msk.f32.mxu1 %vm3275_vm1, %v3274_v36 }
0x19ed   :  { %3039 = vmatprep.subr.mxu1 %v3274_v36 }
0x19ee   :  { %3040 = vmatpush3.msra.mxu1 %v3744_v45 }
0x19ef   :  { %3041 = vmatprep.subr.mxu1 %v3274_v36 }
0x19f0   :  { %3042 = vmatpush3.msra.mxu1 %v3751_v46 }
0x19f1   :  { %3043 = vmatprep.subr.mxu1 %v3274_v36 }
0x19f2   :  { %3044 = vmatpush3.msra.mxu1 %v3758_v47 }
0x19f3   :  { %3059 = vmatprep.subr.mxu1 %v3274_v36 }
0x1aab   :  { %v1826_v58 = vpop.f32.mrf.mxu1 }
0x1aac   :  { %v1830_v59 = vadd.f32 %v1826_v58, %v1513_v56 }
0x1aad   :  { %v3025_v60 = vpop.f32.mrf.mxu1 }
0x1aae   :  { %3222 = vtanh.f32 %v1830_v59  ;;  %v2661_v61 = vmul.f32 -1.442695, %v1830_v59 }
0x1ab0   :  { %3224 = vpow2.f32 %v2661_v61 }
0x1abb   :  { %v3223_v25 = vpop.eup %3222 }
0x1abc   :  { %1840 = vrot.lane.b32.xlu0 %v3223_v25, %s3276_s5 }
0x1abd   :  { %v3225_v62 = vpop.eup %3224 }
0x1abe   :  { %v1834_v63 = vadd.f32 1.0, %v3225_v62 }
0x1ac0   :  { %3226 = vrcp.f32 %v1834_v63 }
0x1acd   :  { %v3227_v27 = vpop.eup %3226 }
0x1ace   :  { %v1838_v1 = vmul.f32 %v3227_v27, %v1745_v43 }
0x1b2e   :  { %v1841_v0 = vpop.permute.xlu0 %1840 }
0x1b2f   :  { %v1843_v7 = vmul.f32 %v3227_v27, %v1841_v0 }
0x1b31   :  { %1845 = vrot.lane.b32.xlu1 %v1843_v7, %s3277_s22 }
0x1ba3   :  { %v1846_v2 = vpop.permute.xlu1 %1845 }
0x1ba4   :  { %v1848_v3 = vadd.f32 %v1846_v2, %v1838_v1  ;;  %v1533_v1 = vadd.f32 %v3794_v57, %v3846_v55 }
0x1ba6   :  { %3228 = vtanh.f32 %v1848_v3 }
0x1bb3   :  { %v3229_v9 = vpop.eup %3228 }
0x1bb4   :  { %1851 = vrot.lane.b32.xlu0 %v3229_v9, %s3276_s5 }
0x1c26   :  { %v1852_v4 = vpop.permute.xlu0 %1851 }
0x1c27   :  { %v1854_v10 = vmul.f32 %v3227_v27, %v1852_v4 }
0x1c29   :  { %1856 = vrot.lane.b32.xlu1 %v1854_v10, %s3277_s22 }
0x1c9b   :  { %v1857_v33 = vpop.permute.xlu1 %1856 }
0x1c9c   :  { %1859 = vst.msk [vmem:[#allocation3 + $0x10] sm:$0xff] %vm412_vm0, %v1857_v33  ;;  %3035 = vmatmul.mubr.msk.f32.vlgmr.msra.gmra.mxu0 %vm412_vm0, %v1857_v33 }
0x1c9d   :  { %3049 = vmatpush3.msra.mxu0 %v3738_v21  ;;  %3056 = vmatprep.mubr.msk.f32.mxu0 %vm3275_vm1, %v3274_v36 }
0x1c9e   :  { %3050 = vmatprep.subr.mxu0 %v3274_v36 }
0x1c9f   :  { %3051 = vmatpush3.msra.mxu0 %v3744_v45 }
0x1ca0   :  { %3052 = vmatprep.subr.mxu0 %v3274_v36 }
0x1ca1   :  { %3053 = vmatpush3.msra.mxu0 %v3751_v46 }
0x1ca2   :  { %3054 = vmatprep.subr.mxu0 %v3274_v36 }
0x1ca3   :  { %3055 = vmatpush3.msra.mxu0 %v3758_v47 }
0x1ca4   :  { %3070 = vmatprep.subr.mxu0 %v3274_v36 }
0x1d5c   :  { %v1929_v11 = vpop.f32.mrf.mxu0 }
0x1d5d   :  { %v1933_v6 = vadd.f32 %v1929_v11, %v1518_v5 }
0x1d5e   :  { %v3036_v8 = vpop.f32.mrf.mxu0 }
0x1d5f   :  { %3230 = vtanh.f32 %v1933_v6  ;;  %v2663_v12 = vmul.f32 -1.442695, %v1933_v6 }
0x1d61   :  { %3232 = vpow2.f32 %v2663_v12 }
0x1d6c   :  { %v3231_v23 = vpop.eup %3230 }
0x1d6d   :  { %1943 = vrot.lane.b32.xlu0 %v3231_v23, %s3276_s5 }
0x1d6e   :  { %v3233_v13 = vpop.eup %3232 }
0x1d6f   :  { %v1937_v14 = vadd.f32 1.0, %v3233_v13 }
0x1d71   :  { %3234 = vrcp.f32 %v1937_v14 }
0x1d7e   :  { %v3235_v15 = vpop.eup %3234 }
0x1d7f   :  { %v1941_v19 = vmul.f32 %v3235_v15, %v1848_v3 }
0x1ddf   :  { %v1944_v17 = vpop.permute.xlu0 %1943 }
0x1de0   :  { %v1946_v18 = vmul.f32 %v3235_v15, %v1944_v17 }
0x1de2   :  { %1948 = vrot.lane.b32.xlu1 %v1946_v18, %s3277_s22  ;;  %v1538_v18 = vadd.f32 %v3844_v54, %v3794_v57  ;;  %v2383_v57 = vld [vmem:[%s4008_s1] sm:$0xff]  ;;  %v2385_v54 = vld [vmem:[%s4008_s1 + $0x10] sm:$0xff] }
0x1e54   :  { %v1949_v20 = vpop.permute.xlu1 %1948 }
0x1e55   :  { %v1951_v16 = vadd.f32 %v1949_v20, %v1941_v19 }
0x1e57   :  { %3236 = vtanh.f32 %v1951_v16 }
0x1e64   :  { %v3237_v22 = vpop.eup %3236 }
0x1e65   :  { %1954 = vrot.lane.b32.xlu0 %v3237_v22, %s3276_s5 }
0x1ed7   :  { %v1955_v24 = vpop.permute.xlu0 %1954 }
0x1ed8   :  { %v1957_v26 = vmul.f32 %v3235_v15, %v1955_v24 }
0x1eda   :  { %1959 = vrot.lane.b32.xlu1 %v1957_v26, %s3277_s22 }
0x1f4c   :  { %v1960_v28 = vpop.permute.xlu1 %1959 }
0x1f4d   :  { %1962 = vst.msk [vmem:[#allocation3 + $0x18] sm:$0xff] %vm412_vm0, %v1960_v28  ;;  %3046 = vmatmul.mubr.msk.f32.vlgmr.msra.gmra.mxu1 %vm412_vm0, %v1960_v28 }
0x1f4e   :  { %3060 = vmatpush3.msra.mxu1 %v3738_v21  ;;  %3067 = vmatprep.mubr.msk.f32.mxu1 %vm3275_vm1, %v3274_v36 }
0x1f4f   :  { %3061 = vmatprep.subr.mxu1 %v3274_v36 }
0x1f50   :  { %3062 = vmatpush3.msra.mxu1 %v3744_v45 }
0x1f51   :  { %3063 = vmatprep.subr.mxu1 %v3274_v36 }
0x1f52   :  { %3064 = vmatpush3.msra.mxu1 %v3751_v46 }
0x1f53   :  { %3065 = vmatprep.subr.mxu1 %v3274_v36 }
0x1f54   :  { %3066 = vmatpush3.msra.mxu1 %v3758_v47 }
0x200d   :  { %v2032_v31 = vpop.f32.mrf.mxu1 }
0x200e   :  { %v2036_v32 = vadd.f32 %v2032_v31, %v1523_v29 }
0x200f   :  { %v3047_v34 = vpop.f32.mrf.mxu1 }
0x2010   :  { %3238 = vtanh.f32 %v2036_v32  ;;  %v2665_v37 = vmul.f32 -1.442695, %v2036_v32  ;;  %v2386_v34 = vld [vmem:[%s4008_s1 + $0x18] sm:$0xff] }
0x2012   :  { %3240 = vpow2.f32 %v2665_v37  ;;  %v2389_v37 = vld [vmem:[%s4008_s1 + $0x30] sm:$0xff] }
0x201d   :  { %v3239_v35 = vpop.eup %3238 }
0x201e   :  { %2046 = vrot.lane.b32.xlu0 %v3239_v35, %s3276_s5  ;;  %v2388_v35 = vld [vmem:[%s4008_s1 + $0x28] sm:$0xff] }
0x201f   :  { %v3241_v38 = vpop.eup %3240 }
0x2020   :  { %v2040_v39 = vadd.f32 1.0, %v3241_v38 }
0x2022   :  { %3242 = vrcp.f32 %v2040_v39 }
0x202f   :  { %v3243_v40 = vpop.eup %3242 }
0x2030   :  { %v2044_v43 = vmul.f32 %v3243_v40, %v1951_v16 }
0x2090   :  { %v2047_v41 = vpop.permute.xlu0 %2046 }
0x2091   :  { %v2049_v42 = vmul.f32 %v3243_v40, %v2047_v41  ;;  %v2442_v41 = vld [vmem:[%s4009_s9 + $0x18] sm:$0xff] }
0x2092   :  { %3081 = vmatprep.subr.mxu1 %v2442_v41 }
0x2093   :  { %2051 = vrot.lane.b32.xlu1 %v2049_v42, %s3277_s22  ;;  %v2441_v42 = vld [vmem:[%s4009_s9 + $0x10] sm:$0xff] }
0x2105   :  { %v2052_v44 = vpop.permute.xlu1 %2051 }
0x2106   :  { %v2054_v30 = vadd.f32 %v2052_v44, %v2044_v43  ;;  %v2440_v43 = vld [vmem:[%s4009_s9 + $0x8] sm:$0xff]  ;;  %v2375_v44 = vld [vmem:[#allocation3] sm:$0xff] }
0x2108   :  { %3244 = vtanh.f32 %v2054_v30 }
0x2115   :  { %v3245_v48 = vpop.eup %3244 }
0x2116   :  { %2057 = vrot.lane.b32.xlu0 %v3245_v48, %s3276_s5 }
0x2188   :  { %v2058_v49 = vpop.permute.xlu0 %2057 }
0x2189   :  { %v2060_v50 = vmul.f32 %v3243_v40, %v2058_v49 }
0x218b   :  { %2062 = vrot.lane.b32.xlu1 %v2060_v50, %s3277_s22  ;;  %v2439_v50 = vld [vmem:[%s4009_s9] sm:$0xff] }
0x21fd   :  { %v2063_v51 = vpop.permute.xlu1 %2062 }
0x21fe   :  { %2065 = vst.msk [vmem:[#allocation3 + $0x20] sm:$0xff] %vm412_vm0, %v2063_v51  ;;  %3057 = vmatmul.mubr.msk.f32.vlgmr.msra.gmra.mxu0 %vm412_vm0, %v2063_v51  ;;  %v2384_v51 = vld [vmem:[%s4008_s1 + $0x8] sm:$0xff] }
0x21ff   :  { %3071 = vmatpush3.msra.mxu0 %v3738_v21  ;;  %3078 = vmatprep.mubr.msk.f32.mxu0 %vm3275_vm1, %v3274_v36 }
0x2200   :  { %3072 = vmatprep.subr.mxu0 %v3274_v36 }
0x2201   :  { %3073 = vmatpush3.msra.mxu0 %v3744_v45 }
0x2202   :  { %3074 = vmatprep.subr.mxu0 %v3274_v36 }
0x2203   :  { %3075 = vmatpush3.msra.mxu0 %v3751_v46 }
0x2204   :  { %3076 = vmatprep.subr.mxu0 %v3274_v36 }
0x2205   :  { %3077 = vmatpush3.msra.mxu0 %v3758_v47 }
0x22be   :  { %v2135_v56 = vpop.f32.mrf.mxu0 }
0x22bf   :  { %v2139_v21 = vadd.f32 %v2135_v56, %v1528_v53  ;;  %v2387_v53 = vld [vmem:[%s4008_s1 + $0x20] sm:$0xff] }
0x22c0   :  { %v3058_v58 = vpop.f32.mrf.mxu0 }
0x22c1   :  { %3246 = vtanh.f32 %v2139_v21  ;;  %v2667_v60 = vmul.f32 -1.442695, %v2139_v21 }
0x22c3   :  { %3248 = vpow2.f32 %v2667_v60 }
0x22ce   :  { %v3247_v59 = vpop.eup %3246 }
0x22cf   :  { %2149 = vrot.lane.b32.xlu0 %v3247_v59, %s3276_s5  ;;  %v2390_v59 = vld [vmem:[%s4008_s1 + $0x38] sm:$0xff] }
0x22d0   :  { %v3249_v45 = vpop.eup %3248 }
0x22d1   :  { %v2143_v25 = vadd.f32 1.0, %v3249_v45  ;;  %v2376_v45 = vld [vmem:[#allocation3 + $0x8] sm:$0xff] }
0x22d3   :  { %3250 = vrcp.f32 %v2143_v25 }
0x22e0   :  { %v3251_v46 = vpop.eup %3250 }
0x22e1   :  { %v2147_v47 = vmul.f32 %v3251_v46, %v2054_v30 }
0x2341   :  { %v2150_v61 = vpop.permute.xlu0 %2149 }
0x2342   :  { %v2152_v36 = vmul.f32 %v3251_v46, %v2150_v61 }
0x2344   :  { %2154 = vrot.lane.b32.xlu1 %v2152_v36, %s3277_s22 }
0x23b6   :  { %v2155_v62 = vpop.permute.xlu1 %2154 }
0x23b7   :  { %v2157_v52 = vadd.f32 %v2155_v62, %v2147_v47  ;;  %v2378_v62 = vld [vmem:[#allocation3 + $0x18] sm:$0xff] }
0x23b9   :  { %3252 = vtanh.f32 %v2157_v52 }
0x23c6   :  { %v3253_v63 = vpop.eup %3252 }
0x23c7   :  { %2160 = vrot.lane.b32.xlu0 %v3253_v63, %s3276_s5 }
0x2439   :  { %v2161_v27 = vpop.permute.xlu0 %2160 }
0x243a   :  { %v2163_v0 = vmul.f32 %v3251_v46, %v2161_v27  ;;  %v2377_v46 = vld [vmem:[#allocation3 + $0x10] sm:$0xff] }
0x243c   :  { %2165 = vrot.lane.b32.xlu1 %v2163_v0, %s3277_s22 }
0x24ae   :  { %v2166_v7 = vpop.permute.xlu1 %2165 }
0x24af   :  { %2168 = vst.msk [vmem:[#allocation3 + $0x28] sm:$0xff] %vm412_vm0, %v2166_v7  ;;  %3068 = vmatmul.mubr.msk.f32.vlgmr.msra.gmra.mxu1 %vm412_vm0, %v2166_v7 }
0x24b0   :  { %3082 = vmatpush3.msra.mxu1 %v2442_v41 }
0x24b1   :  { %3083 = vmatprep.subr.mxu1 %v2441_v42 }
0x24b2   :  { %3084 = vmatpush3.msra.mxu1 %v2441_v42 }
0x24b3   :  { %3085 = vmatprep.subr.mxu1 %v2440_v43 }
0x24b4   :  { %3086 = vmatpush3.msra.mxu1 %v2440_v43 }
0x24b5   :  { %3087 = vmatprep.subr.mxu1 %v2439_v50 }
0x24b6   :  { %3088 = vmatpush3.msra.mxu1 %v2439_v50 }
0x256f   :  { %v2238_v2 = vpop.f32.mrf.mxu1 }
0x2570   :  { %v2242_v3 = vadd.f32 %v2238_v2, %v1533_v1  ;;  %v2380_v1 = vld [vmem:[#allocation3 + $0x28] sm:$0xff] }
0x2571   :  { %v3069_v9 = vpop.f32.mrf.mxu1 }
0x2572   :  { %3254 = vtanh.f32 %v2242_v3  ;;  %v2669_v10 = vmul.f32 -1.442695, %v2242_v3 }
0x2574   :  { %3256 = vpow2.f32 %v2669_v10 }
0x257f   :  { %v3255_v4 = vpop.eup %3254 }
0x2580   :  { %2252 = vrot.lane.b32.xlu0 %v3255_v4, %s3276_s5 }
0x2581   :  { %v3257_v33 = vpop.eup %3256 }
0x2582   :  { %v2246_v5 = vadd.f32 1.0, %v3257_v33 }
0x2584   :  { %3258 = vrcp.f32 %v2246_v5 }
0x2591   :  { %v3259_v11 = vpop.eup %3258 }
0x2592   :  { %v2250_v23 = vmul.f32 %v3259_v11, %v2157_v52  ;;  %v2379_v52 = vld [vmem:[#allocation3 + $0x20] sm:$0xff] }
0x25f2   :  { %v2253_v6 = vpop.permute.xlu0 %2252 }
0x25f3   :  { %v2255_v8 = vmul.f32 %v3259_v11, %v2253_v6 }
0x25f5   :  { %2257 = vrot.lane.b32.xlu1 %v2255_v8, %s3277_s22 }
0x2667   :  { %v2258_v12 = vpop.permute.xlu1 %2257 }
0x2668   :  { %v2260_v55 = vadd.f32 %v2258_v12, %v2250_v23 }
0x266a   :  { %3260 = vtanh.f32 %v2260_v55 }
0x2677   :  { %v3261_v13 = vpop.eup %3260 }
0x2678   :  { %2263 = vrot.lane.b32.xlu0 %v3261_v13, %s3276_s5 }
0x26ea   :  { %v2264_v14 = vpop.permute.xlu0 %2263 }
0x26eb   :  { %v2266_v15 = vmul.f32 %v3259_v11, %v2264_v14  ;;  %v2672_v11 = vld [vmem:[%s4010_s10] ss:$0 sm:$0xff] }
0x26ed   :  { %2268 = vrot.lane.b32.xlu1 %v2266_v15, %s3277_s22 }
0x275f   :  { %v2269_v17 = vpop.permute.xlu1 %2268 }
0x2760   :  { %2271 = vst.msk [vmem:[#allocation3 + $0x30] sm:$0xff] %vm412_vm0, %v2269_v17  ;;  %3079 = vmatmul.mubr.msk.f32.vlgmr.msra.gmra.mxu0 %vm412_vm0, %v2269_v17 }
0x2767   :  { %v2381_v3 = vld [vmem:[#allocation3 + $0x30] sm:$0xff] }
0x2820   :  { %v2341_v19 = vpop.f32.mrf.mxu0 }
0x2821   :  { %v2345_v20 = vadd.f32 %v2341_v19, %v1538_v18 }
0x2822   :  { %v3080_v16 = vpop.f32.mrf.mxu0 }
0x2823   :  { %3262 = vtanh.f32 %v2345_v20  ;;  %v2671_v24 = vmul.f32 -1.442695, %v2345_v20 }
0x2825   :  { %3264 = vpow2.f32 %v2671_v24 }
0x2830   :  { %v3263_v22 = vpop.eup %3262 }
0x2831   :  { %2355 = vrot.lane.b32.xlu0 %v3263_v22, %s3276_s5 }
0x2832   :  { %v3265_v26 = vpop.eup %3264 }
0x2833   :  { %v2349_v28 = vadd.f32 1.0, %v3265_v26 }
0x2835   :  { %3266 = vrcp.f32 %v2349_v28 }
0x2842   :  { %v3267_v29 = vpop.eup %3266 }
0x2843   :  { %v2353_v38 = vmul.f32 %v3267_v29, %v2260_v55 }
0x28a3   :  { %v2356_v31 = vpop.permute.xlu0 %2355 }
0x28a4   :  { %v2358_v32 = vmul.f32 %v3267_v29, %v2356_v31 }
0x28a6   :  { %2360 = vrot.lane.b32.xlu1 %v2358_v32, %s3277_s22 }
0x28aa   :  { %2393 = vperm.xlu1 %3140, %v2383_v57  }
0x28ae   :  { %2403 = vperm.xlu1 %3140, %v2385_v54  }
0x28b2   :  { %2408 = vperm.xlu1 %3140, %v2386_v34  }
0x28b6   :  { %2418 = vperm.xlu1 %3140, %v2388_v35  }
0x28ba   :  { %2423 = vperm.xlu1 %3140, %v2389_v37  }
0x2918   :  { %v2361_v39 = vpop.permute.xlu1 %2360 }
0x2919   :  { %v2363_v40 = vadd.f32 %v2361_v39, %v2353_v38 }
0x291b   :  { %3268 = vtanh.f32 %v2363_v40 }
0x2925   :  { %v2394_v30 = vpop.permute.xlu1 %2393 }
0x2926   :  { %v2431_v48 = vmul.f32 %v2394_v30, %v2375_v44 }
0x2928   :  { %v3269_v49 = vpop.eup %3268  ;;  %3089 = vmatprep.mubr.msk.f32.mxu1 %vm412_vm0, %v2431_v48 }
0x2929   :  { %2366 = vrot.lane.b32.xlu0 %v3269_v49, %s3276_s5  ;;  %v2404_v58 = vpop.permute.xlu1 %2403 }
0x292a   :  { %v2433_v47 = vmul.f32 %v2404_v58, %v2377_v46 }
0x292d   :  { %2398 = vperm.xlu0 %3141, %v2384_v51   ;;  %v2409_v60 = vpop.permute.xlu1 %2408 }
0x292e   :  { %v2434_v27 = vmul.f32 %v2409_v60, %v2378_v62 }
0x2931   :  { %2413 = vperm.xlu0 %3141, %v2387_v53   ;;  %v2419_v61 = vpop.permute.xlu1 %2418 }
0x2932   :  { %v2436_v2 = vmul.f32 %v2419_v61, %v2380_v1 }
0x2935   :  { %v2424_v7 = vpop.permute.xlu1 %2423 }
0x2936   :  { %v2437_v9 = vmul.f32 %v2424_v7, %v2381_v3 }
0x299b   :  { %v2367_v56 = vpop.permute.xlu0 %2366 }
0x299c   :  { %v2369_v21 = vmul.f32 %v3267_v29, %v2367_v56 }
0x299e   :  { %2371 = vrot.lane.b32.xlu0 %v2369_v21, %s3277_s22 }
0x29a2   :  { %2428 = vperm.xlu0 %3141, %v2390_v59  }
0x29a8   :  { %v2399_v25 = vpop.permute.xlu0 %2398 }
0x29a9   :  { %v2432_v36 = vmul.f32 %v2399_v25, %v2376_v45 }
0x29ab   :  { %3090 = vmatmul.mubr.msk.f32.vlgmr.msra.gmra.mxu1 %vm412_vm0, %v2432_v36 }
0x29ac   :  { %3092 = vmatprep.mubr.msk.f32.mxu1 %vm412_vm0, %v2433_v47  ;;  %v2414_v63 = vpop.permute.xlu0 %2413 }
0x29ad   :  { %v2435_v0 = vmul.f32 %v2414_v63, %v2379_v52 }
0x29af   :  { %3093 = vmatmul.mubr.msk.f32.gmra.mxu1 %vm412_vm0, %v2434_v27 }
0x29b0   :  { %3095 = vmatprep.mubr.msk.f32.mxu1 %vm412_vm0, %v2435_v0 }
0x29b3   :  { %3096 = vmatmul.mubr.msk.f32.gmra.mxu1 %vm412_vm0, %v2436_v2 }
0x29b4   :  { %3098 = vmatprep.mubr.msk.f32.mxu1 %vm412_vm0, %v2437_v9 }
0x2a10   :  { %v2372_v4 = vpop.permute.xlu0 %2371 }
0x2a11   :  { %2374 = vst.msk [vmem:[#allocation3 + $0x38] sm:$0xff] %vm412_vm0, %v2372_v4 }
0x2a18   :  { %v2382_v10 = vld [vmem:[#allocation3 + $0x38] sm:$0xff] }
0x2a1d   :  { %v2429_v33 = vpop.permute.xlu0 %2428 }
0x2a1e   :  { %v2438_v5 = vmul.f32 %v2429_v33, %v2382_v10 }
0x2a20   :  { %3099 = vmatmul.mubr.msk.f32.gmra.mxu1 %vm412_vm0, %v2438_v5 }
0x2a6b   :  { %v3091_v6 = vpop.f32.mrf.mxu1 }
0x2a6c   :  { %v2546_v8 = vadd.f32 %v3091_v6, %v2672_v11 }
0x2a6d   :  { %v2540_v23 = vpop.f32.mrf.mxu1 }
0x2a6e   :  { %2581 = vst.msk [vmem:[%s4011_s11 + $0x8] sm:$0xff] %vm2579_vm2, %v2546_v8  ;;  %v2541_v12 = vadd.f32 %v2672_v11, %v2540_v23 }
0x2a6f   :  { %v3094_v55 = vpop.f32.mrf.mxu1 }
0x2a70   :  { %2580 = vst.msk [vmem:[%s4011_s11] sm:$0xff] %vm2579_vm2, %v2541_v12  ;;  %v2556_v13 = vadd.f32 %v3094_v55, %v2672_v11 }
0x2a71   :  { %v2550_v14 = vpop.f32.mrf.mxu1 }
0x2a72   :  { %2583 = vst.msk [vmem:[%s4011_s11 + $0x18] sm:$0xff] %vm2579_vm2, %v2556_v13  ;;  %v2551_v15 = vadd.f32 %v2672_v11, %v2550_v14 }
0x2a73   :  { %v3097_v17 = vpop.f32.mrf.mxu1 }
0x2a74   :  { %2582 = vst.msk [vmem:[%s4011_s11 + $0x10] sm:$0xff] %vm2579_vm2, %v2551_v15  ;;  %v2566_v18 = vadd.f32 %v3097_v17, %v2672_v11 }
0x2a75   :  { %v2560_v19 = vpop.f32.mrf.mxu1 }
0x2a76   :  { %2585 = vst.msk [vmem:[%s4011_s11 + $0x28] sm:$0xff] %vm2579_vm2, %v2566_v18  ;;  %v2561_v20 = vadd.f32 %v2672_v11, %v2560_v19 }
0x2a78   :  { %2584 = vst.msk [vmem:[%s4011_s11 + $0x20] sm:$0xff] %vm2579_vm2, %v2561_v20 }
0x2ae0   :  { %v3100_v16 = vpop.f32.mrf.mxu1 }
0x2ae1   :  { %v2576_v22 = vadd.f32 %v3100_v16, %v2672_v11 }
0x2ae2   :  { %v2570_v24 = vpop.f32.mrf.mxu1 }
0x2ae3   :  { %2587 = vst.msk [vmem:[%s4011_s11 + $0x38] sm:$0xff] %vm2579_vm2, %v2576_v22  ;;  %v2571_v26 = vadd.f32 %v2672_v11, %v2570_v24 }
0x2ae5   :  { %2586 = vst.msk [vmem:[%s4011_s11 + $0x30] sm:$0xff] %vm2579_vm2, %v2571_v26 }

</bundles_post_ra>
